<compile_context>
chip_gen: v7x
topology: tpu7x:2x2x1
jax: 0.10.0
libtpu: 0.0.40
codegen_flags: <defaults>
</compile_context>

<pallas_src>
import functools
import math

import jax
import jax.numpy as jnp
from jax.experimental import pallas as pl
from jax.experimental.pallas import tpu as pltpu


# ----------------------------------------------------------------------------
# Fused attention kernel (one grid step = `bb` batch elements)
# ----------------------------------------------------------------------------
def _attention_kernel(x_ref, wqkv_ref, bqkv_ref, wo_ref, bo_ref, o_ref, *,
                      n_heads, adim):
    """x_ref: (bb, H, T) native layout.  wqkv: (H, 3*NH*A) bf16 (Q part
    pre-scaled by 1/sqrt(A)).  bqkv: (1, 3*NH*A) f32.  wo: (NH*A, H) bf16.
    bo: (1, H) f32.  o_ref: (bb, H, T)."""
    bb, _, T = x_ref.shape
    NA = n_heads * adim

    # Fold the module's x.transpose(2, 1) into the kernel: (bb, H, T) -> (bb*T, H)
    xt = jnp.transpose(x_ref[...], (0, 2, 1)).reshape(bb * T, -1)

    # Fused Q/K/V projection: one lane-dense (bb*T, H) @ (H, 3*NH*A) matmul.
    qkv = jnp.dot(xt.astype(jnp.bfloat16), wqkv_ref[...],
                  preferred_element_type=jnp.float32) + bqkv_ref[...]

    attn_rows = []
    for b in range(bb):                               # static unroll (bb is 1 or B)
        qkv_b = qkv[b * T:(b + 1) * T]
        heads = []
        for h in range(n_heads):                      # static unroll (1 or 2 heads)
            q = qkv_b[:, h * adim:(h + 1) * adim]                 # scale pre-folded
            k = qkv_b[:, NA + h * adim:NA + (h + 1) * adim]
            v = qkv_b[:, 2 * NA + h * adim:2 * NA + (h + 1) * adim]
            # scores = (Q/sqrt(A)) @ K^T without an explicit transpose.
            s = jax.lax.dot_general(
                q.astype(jnp.bfloat16), k.astype(jnp.bfloat16),
                dimension_numbers=(((1,), (1,)), ((), ())),
                preferred_element_type=jnp.float32)               # (T, T)
            # softmax over the key axis (module's dim=2), stabilized, f32.
            m = jnp.max(s, axis=-1, keepdims=True)
            e = jnp.exp(s - m)
            p = e * pl.reciprocal(jnp.sum(e, axis=-1, keepdims=True), approx=True)
            heads.append(jnp.dot(p.astype(jnp.bfloat16), v.astype(jnp.bfloat16),
                                 preferred_element_type=jnp.float32))   # (T, A)
        attn_rows.append(heads[0] if n_heads == 1
                         else jnp.concatenate(heads, axis=-1))          # (T, NH*A)
    attn_all = (attn_rows[0] if bb == 1
                else jnp.concatenate(attn_rows, axis=0))                # (bb*T, NH*A)

    # Head concat + Linear(NH*A -> H) as a single lane-dense matmul.
    out = jnp.dot(attn_all.astype(jnp.bfloat16), wo_ref[...],
                  preferred_element_type=jnp.float32) + bo_ref[...]     # (bb*T, H)

    # Fold the final .transpose(2, 1): write natively in (bb, H, T) layout.
    o_ref[...] = jnp.transpose(out.reshape(bb, T, -1), (0, 2, 1)).astype(o_ref.dtype)


# ----------------------------------------------------------------------------
# Wrapper
# ----------------------------------------------------------------------------
def _default_batch_block(batch):
    """Grid policy: one step covering all batches on single-TensorCore chips
    (v5e/v6e -> fewer fixed per-step costs, bigger matmul M); one batch per
    grid step on dual-TensorCore v7x so both cores get work."""
    try:
        kind = jax.devices()[0].device_kind.lower()
    except Exception:
        return batch
    if "v7" in kind and batch >= 2 and batch % 2 == 0:
        return 1
    return batch


def attention_forward(x, kparams, *, n_heads, attention_dims, batch_block=None):
    """x: (B, input_dims, T) -> (B, input_dims, T), matching Attention.forward."""
    B, H, T = x.shape
    NA = n_heads * attention_dims
    bb = batch_block if batch_block is not None else _default_batch_block(B)
    assert B % bb == 0

    kern = functools.partial(_attention_kernel, n_heads=n_heads,
                             adim=attention_dims)
    flops = 2 * B * T * (3 * H * NA + 2 * n_heads * T * attention_dims + NA * H)
    bytes_accessed = (4 * x.size                                # input (f32)
                      + 2 * (kparams["wqkv"].size + kparams["wo"].size)   # bf16 weights
                      + 4 * (kparams["bqkv"].size + kparams["bo"].size)   # f32 biases
                      + 4 * x.size)                             # output (f32)

    return pl.pallas_call(
        kern,
        out_shape=jax.ShapeDtypeStruct((B, H, T), x.dtype),
        grid=(B // bb,),
        in_specs=[
            pl.BlockSpec((bb, H, T), lambda g: (g, 0, 0)),      # x, native layout
            pl.BlockSpec((H, 3 * NA), lambda g: (0, 0)),        # packed Wqkv (bf16)
            pl.BlockSpec((1, 3 * NA), lambda g: (0, 0)),        # packed bqkv (f32)
            pl.BlockSpec((NA, H), lambda g: (0, 0)),            # Wout (bf16)
            pl.BlockSpec((1, H), lambda g: (0, 0)),             # bout (f32)
        ],
        out_specs=pl.BlockSpec((bb, H, T), lambda g: (g, 0, 0)),
        compiler_params=pltpu.CompilerParams(dimension_semantics=("parallel",)),
        cost_estimate=pl.CostEstimate(flops=flops,
                                      transcendentals=B * n_heads * T * T,
                                      bytes_accessed=bytes_accessed),
    )(x, kparams["wqkv"], kparams["bqkv"], kparams["wo"], kparams["bo"])


# ----------------------------------------------------------------------------
# Deterministic parameter construction (PyTorch-Linear-style init)
# ----------------------------------------------------------------------------
def init_params(key, input_dims, attention_dims, n_heads=1):
    """Logical (unfused) parameters in math layout."""
    H, A, NH = input_dims, attention_dims, n_heads

    def linear_init(k, fan_in, w_shape, b_shape):
        kw, kb = jax.random.split(k)
        bound = 1.0 / math.sqrt(fan_in)
        return (jax.random.uniform(kw, w_shape, jnp.float32, -bound, bound),
                jax.random.uniform(kb, b_shape, jnp.float32, -bound, bound))

    kq, kk, kv, ko = jax.random.split(key, 4)
    wq, bq = linear_init(kq, H, (NH, H, A), (NH, A))
    wk, bk = linear_init(kk, H, (NH, H, A), (NH, A))
    wv, bv = linear_init(kv, H, (NH, H, A), (NH, A))
    # attention_head_projection: Linear(NH*A -> H) in math layout (NH*A, H).
    # (To load real PyTorch weights, use torch_linear.weight.T here.)
    wo, bo = linear_init(ko, NH * A, (NH * A, H), (H,))
    return dict(wq=wq, bq=bq, wk=wk, bk=bk, wv=wv, bv=bv, wo=wo, bo=bo)


def prepare_params(params, attention_dims):
    """One-time host-side transform into the fused kernel layout:
    - packs Wq|Wk|Wv into (H, 3*NH*A) (heads minor inside each block) and the
      biases into (1, 3*NH*A),
    - folds 1/sqrt(attention_dims) into the Q weights/bias,
    - casts matmul weights to bf16 (biases stay f32; accumulation is f32)."""
    NH, H, A = params["wq"].shape
    scale = 1.0 / math.sqrt(attention_dims)

    def flat_w(w):                      # (NH, H, A) -> (H, NH*A)
        return jnp.concatenate([w[h] for h in range(NH)], axis=-1)

    wqkv = jnp.concatenate([flat_w(params["wq"] * scale),
                            flat_w(params["wk"]),
                            flat_w(params["wv"])], axis=-1)
    bqkv = jnp.concatenate([(params["bq"] * scale).reshape(1, NH * A),
                            params["bk"].reshape(1, NH * A),
                            params["bv"].reshape(1, NH * A)], axis=-1)
    return dict(wqkv=wqkv.astype(jnp.bfloat16),
                bqkv=bqkv.astype(jnp.float32),
                wo=params["wo"].astype(jnp.bfloat16),
                bo=params["bo"].reshape(1, H).astype(jnp.float32))


# ----------------------------------------------------------------------------
# Pure-JAX reference (same math, f32 HIGHEST, no Pallas) for correctness check
# ----------------------------------------------------------------------------
def attention_ref(x, params, attention_dims):
    prec = jax.lax.Precision.HIGHEST
    xt = jnp.transpose(x, (0, 2, 1))                   # (B, T, H)
    NH = params["wq"].shape[0]
    heads = []
    for h in range(NH):
        q = jnp.einsum("bth,ha->bta", xt, params["wq"][h], precision=prec) + params["bq"][h]
        k = jnp.einsum("bth,ha->bta", xt, params["wk"][h], precision=prec) + params["bk"][h]
        v = jnp.einsum("bth,ha->bta", xt, params["wv"][h], precision=prec) + params["bv"][h]
        s = jnp.einsum("bta,bsa->bts", q, k, precision=prec) / math.sqrt(attention_dims)
        p = jax.nn.softmax(s, axis=-1)
        heads.append(jnp.einsum("bts,bsa->bta", p, v, precision=prec))
    multihead = heads[0] if NH == 1 else jnp.concatenate(heads, axis=-1)
    out = jnp.einsum("bta,ah->bth", multihead, params["wo"], precision=prec) + params["bo"]
    return jnp.transpose(out, (0, 2, 1))


if __name__ == "__main__":
    B = 2
    input_dims = 128      # H: feature size (lane-dense 128-wide matmuls)
    attention_dims = 64   # A
    seq_len = 96          # T (multiple of 8 -> clean sublane tiling)

    key = jax.random.PRNGKey(0)
    for n_heads in (1, 2):            # module default is 1; 2-head path also exercised
        kx, kp = jax.random.split(jax.random.fold_in(key, n_heads))
        x = jax.random.normal(kx, (B, input_dims, seq_len), jnp.float32)
        params = init_params(kp, input_dims, attention_dims, n_heads)
        kparams = prepare_params(params, attention_dims)

        out = attention_forward(x, kparams, n_heads=n_heads,
                                attention_dims=attention_dims)
        out = jax.block_until_ready(out)
        assert out.shape == (B, input_dims, seq_len), out.shape
        assert bool(jnp.all(jnp.isfinite(out)))

        ref = attention_ref(x, params, attention_dims)
        assert bool(jnp.allclose(out, ref, rtol=1e-2, atol=1e-2)), (
            float(jnp.max(jnp.abs(out - ref))))

    print("KERNEL_OK")
</pallas_src>

<mosaic_0001>
module attributes {stable_mosaic.version = 11 : i64} {
  func.func @_attention_kernel(%arg0: i32, %arg1: memref<2x128x96xf32, #tpu.memory_space<vmem>>, %arg2: memref<128x192xbf16, #tpu.memory_space<vmem>>, %arg3: memref<1x192xf32, #tpu.memory_space<vmem>>, %arg4: memref<64x128xbf16, #tpu.memory_space<vmem>>, %arg5: memref<1x128xf32, #tpu.memory_space<vmem>>, %arg6: memref<2x128x96xf32, #tpu.memory_space<vmem>>) attributes {dimension_semantics = [#tpu.dimension_semantics<parallel>], iteration_bounds = array<i64: 1>, scalar_prefetch = 0 : i64, scratch_operands = 0 : i64, tpu.core_type = #tpu.core_type<tc>, window_params = [{transform_indices = @transform_0, window_bounds = array<i64: 2, 128, 96>}, {pipeline_mode = #tpu.pipeline_mode<synchronous>, transform_indices = @transform_1, window_bounds = array<i64: 128, 192>}, {pipeline_mode = #tpu.pipeline_mode<synchronous>, transform_indices = @transform_2, window_bounds = array<i64: 1, 192>}, {pipeline_mode = #tpu.pipeline_mode<synchronous>, transform_indices = @transform_3, window_bounds = array<i64: 64, 128>}, {pipeline_mode = #tpu.pipeline_mode<synchronous>, transform_indices = @transform_4, window_bounds = array<i64: 1, 128>}, {transform_indices = @transform_5, window_bounds = array<i64: 2, 128, 96>}]} {
    %c0 = arith.constant 0 : index
    %c0_0 = arith.constant 0 : index
    %c0_1 = arith.constant 0 : index
    %0 = vector.load %arg1[%c0, %c0_0, %c0_1] : memref<2x128x96xf32, #tpu.memory_space<vmem>>, vector<2x128x96xf32>
    %1 = tpu.transpose %0, [0, 2, 1] : vector<2x128x96xf32> -> vector<2x96x128xf32>
    %2 = vector.shape_cast %1 : vector<2x96x128xf32> to vector<192x128xf32>
    %3 = arith.truncf %2 : vector<192x128xf32> to vector<192x128xbf16>
    %c0_2 = arith.constant 0 : index
    %c0_3 = arith.constant 0 : index
    %4 = vector.load %arg2[%c0_2, %c0_3] : memref<128x192xbf16, #tpu.memory_space<vmem>>, vector<128x192xbf16>
    %cst = arith.constant dense<0.000000e+00> : vector<192x192xf32>
    %5 = tpu.matmul %3, %4, %cst {dimension_numbers = #tpu.dot_dimension_numbers<[1], [0], [0], [1], [0, 0, 1, 1], [], []>} : vector<192x128xbf16>, vector<128x192xbf16>, vector<192x192xf32> -> vector<192x192xf32>
    %c0_4 = arith.constant 0 : index
    %c0_5 = arith.constant 0 : index
    %6 = vector.load %arg3[%c0_4, %c0_5] : memref<1x192xf32, #tpu.memory_space<vmem>>, vector<1x192xf32>
    %7 = vector.broadcast %6 : vector<1x192xf32> to vector<192x192xf32>
    %8 = arith.addf %5, %7 : vector<192x192xf32>
    %9 = vector.extract_strided_slice %8 {offsets = [0, 0], sizes = [96, 192], strides = [1, 1]} : vector<192x192xf32> to vector<96x192xf32>
    %10 = vector.extract_strided_slice %9 {offsets = [0, 0], sizes = [96, 64], strides = [1, 1]} : vector<96x192xf32> to vector<96x64xf32>
    %11 = vector.extract_strided_slice %9 {offsets = [0, 64], sizes = [96, 64], strides = [1, 1]} : vector<96x192xf32> to vector<96x64xf32>
    %12 = vector.extract_strided_slice %9 {offsets = [0, 128], sizes = [96, 64], strides = [1, 1]} : vector<96x192xf32> to vector<96x64xf32>
    %13 = arith.truncf %10 : vector<96x64xf32> to vector<96x64xbf16>
    %14 = arith.truncf %11 : vector<96x64xf32> to vector<96x64xbf16>
    %cst_6 = arith.constant dense<0.000000e+00> : vector<96x96xf32>
    %15 = tpu.matmul %13, %14, %cst_6 {dimension_numbers = #tpu.dot_dimension_numbers<[1], [1], [0], [0], [0, 0, 1, 0], [], []>} : vector<96x64xbf16>, vector<96x64xbf16>, vector<96x96xf32> -> vector<96x96xf32>
    %cst_7 = arith.constant dense<0xFF800000> : vector<96xf32>
    %16 = vector.multi_reduction <maximumf>, %15, %cst_7 [1] : vector<96x96xf32> to vector<96xf32>
    %17 = vector.shape_cast %16 : vector<96xf32> to vector<96x1xf32>
    %18 = vector.broadcast %17 : vector<96x1xf32> to vector<96x96xf32>
    %19 = arith.subf %15, %18 : vector<96x96xf32>
    %20 = math.exp %19 : vector<96x96xf32>
    %cst_8 = arith.constant dense<0.000000e+00> : vector<96xf32>
    %21 = vector.multi_reduction <add>, %20, %cst_8 [1] : vector<96x96xf32> to vector<96xf32>
    %22 = vector.shape_cast %21 : vector<96xf32> to vector<96x1xf32>
    %23 = tpu.reciprocal %22 {approx = true} : vector<96x1xf32> -> vector<96x1xf32>
    %24 = vector.broadcast %23 : vector<96x1xf32> to vector<96x96xf32>
    %25 = arith.mulf %20, %24 : vector<96x96xf32>
    %26 = arith.truncf %25 : vector<96x96xf32> to vector<96x96xbf16>
    %27 = arith.truncf %12 : vector<96x64xf32> to vector<96x64xbf16>
    %cst_9 = arith.constant dense<0.000000e+00> : vector<96x64xf32>
    %28 = tpu.matmul %26, %27, %cst_9 {dimension_numbers = #tpu.dot_dimension_numbers<[1], [0], [0], [1], [0, 0, 1, 1], [], []>} : vector<96x96xbf16>, vector<96x64xbf16>, vector<96x64xf32> -> vector<96x64xf32>
    %29 = vector.extract_strided_slice %8 {offsets = [96, 0], sizes = [96, 192], strides = [1, 1]} : vector<192x192xf32> to vector<96x192xf32>
    %30 = vector.extract_strided_slice %29 {offsets = [0, 0], sizes = [96, 64], strides = [1, 1]} : vector<96x192xf32> to vector<96x64xf32>
    %31 = vector.extract_strided_slice %29 {offsets = [0, 64], sizes = [96, 64], strides = [1, 1]} : vector<96x192xf32> to vector<96x64xf32>
    %32 = vector.extract_strided_slice %29 {offsets = [0, 128], sizes = [96, 64], strides = [1, 1]} : vector<96x192xf32> to vector<96x64xf32>
    %33 = arith.truncf %30 : vector<96x64xf32> to vector<96x64xbf16>
    %34 = arith.truncf %31 : vector<96x64xf32> to vector<96x64xbf16>
    %cst_10 = arith.constant dense<0.000000e+00> : vector<96x96xf32>
    %35 = tpu.matmul %33, %34, %cst_10 {dimension_numbers = #tpu.dot_dimension_numbers<[1], [1], [0], [0], [0, 0, 1, 0], [], []>} : vector<96x64xbf16>, vector<96x64xbf16>, vector<96x96xf32> -> vector<96x96xf32>
    %cst_11 = arith.constant dense<0xFF800000> : vector<96xf32>
    %36 = vector.multi_reduction <maximumf>, %35, %cst_11 [1] : vector<96x96xf32> to vector<96xf32>
    %37 = vector.shape_cast %36 : vector<96xf32> to vector<96x1xf32>
    %38 = vector.broadcast %37 : vector<96x1xf32> to vector<96x96xf32>
    %39 = arith.subf %35, %38 : vector<96x96xf32>
    %40 = math.exp %39 : vector<96x96xf32>
    %cst_12 = arith.constant dense<0.000000e+00> : vector<96xf32>
    %41 = vector.multi_reduction <add>, %40, %cst_12 [1] : vector<96x96xf32> to vector<96xf32>
    %42 = vector.shape_cast %41 : vector<96xf32> to vector<96x1xf32>
    %43 = tpu.reciprocal %42 {approx = true} : vector<96x1xf32> -> vector<96x1xf32>
    %44 = vector.broadcast %43 : vector<96x1xf32> to vector<96x96xf32>
    %45 = arith.mulf %40, %44 : vector<96x96xf32>
    %46 = arith.truncf %45 : vector<96x96xf32> to vector<96x96xbf16>
    %47 = arith.truncf %32 : vector<96x64xf32> to vector<96x64xbf16>
    %cst_13 = arith.constant dense<0.000000e+00> : vector<96x64xf32>
    %48 = tpu.matmul %46, %47, %cst_13 {dimension_numbers = #tpu.dot_dimension_numbers<[1], [0], [0], [1], [0, 0, 1, 1], [], []>} : vector<96x96xbf16>, vector<96x64xbf16>, vector<96x64xf32> -> vector<96x64xf32>
    %49 = tpu.concatenate %28, %48 in 0 : vector<96x64xf32>, vector<96x64xf32> -> vector<192x64xf32>
    %50 = arith.truncf %49 : vector<192x64xf32> to vector<192x64xbf16>
    %c0_14 = arith.constant 0 : index
    %c0_15 = arith.constant 0 : index
    %51 = vector.load %arg4[%c0_14, %c0_15] : memref<64x128xbf16, #tpu.memory_space<vmem>>, vector<64x128xbf16>
    %cst_16 = arith.constant dense<0.000000e+00> : vector<192x128xf32>
    %52 = tpu.matmul %50, %51, %cst_16 {dimension_numbers = #tpu.dot_dimension_numbers<[1], [0], [0], [1], [0, 0, 1, 1], [], []>} : vector<192x64xbf16>, vector<64x128xbf16>, vector<192x128xf32> -> vector<192x128xf32>
    %c0_17 = arith.constant 0 : index
    %c0_18 = arith.constant 0 : index
    %53 = vector.load %arg5[%c0_17, %c0_18] : memref<1x128xf32, #tpu.memory_space<vmem>>, vector<1x128xf32>
    %54 = vector.broadcast %53 : vector<1x128xf32> to vector<192x128xf32>
    %55 = arith.addf %52, %54 : vector<192x128xf32>
    %56 = vector.shape_cast %55 : vector<192x128xf32> to vector<2x96x128xf32>
    %57 = tpu.transpose %56, [0, 2, 1] : vector<2x96x128xf32> -> vector<2x128x96xf32>
    %c0_19 = arith.constant 0 : index
    %c0_20 = arith.constant 0 : index
    %c0_21 = arith.constant 0 : index
    %58 = vector.load %arg6[%c0_19, %c0_20, %c0_21] : memref<2x128x96xf32, #tpu.memory_space<vmem>>, vector<2x128x96xf32>
    tpu.vector_store %arg6[%c0_19, %c0_20, %c0_21], %57 {strides = array<i32>} : memref<2x128x96xf32, #tpu.memory_space<vmem>>, vector<2x128x96xf32>,
    return
  }
  func.func @transform_0(%arg0: i32) -> (i32, i32, i32) {
    %c0_i32 = arith.constant 0 : i32
    %c0_i32_0 = arith.constant 0 : i32
    %c0_i32_1 = arith.constant 0 : i32
    return %arg0, %c0_i32, %c0_i32_0 : i32, i32, i32
  }
  func.func @transform_1(%arg0: i32) -> (i32, i32) {
    %c0_i32 = arith.constant 0 : i32
    %c0_i32_0 = arith.constant 0 : i32
    %c0_i32_1 = arith.constant 0 : i32
    return %c0_i32, %c0_i32_0 : i32, i32
  }
  func.func @transform_2(%arg0: i32) -> (i32, i32) {
    %c0_i32 = arith.constant 0 : i32
    %c0_i32_0 = arith.constant 0 : i32
    %c0_i32_1 = arith.constant 0 : i32
    return %c0_i32, %c0_i32_0 : i32, i32
  }
  func.func @transform_3(%arg0: i32) -> (i32, i32) {
    %c0_i32 = arith.constant 0 : i32
    %c0_i32_0 = arith.constant 0 : i32
    %c0_i32_1 = arith.constant 0 : i32
    return %c0_i32, %c0_i32_0 : i32, i32
  }
  func.func @transform_4(%arg0: i32) -> (i32, i32) {
    %c0_i32 = arith.constant 0 : i32
    %c0_i32_0 = arith.constant 0 : i32
    %c0_i32_1 = arith.constant 0 : i32
    return %c0_i32, %c0_i32_0 : i32, i32
  }
  func.func @transform_5(%arg0: i32) -> (i32, i32, i32) {
    %c0_i32 = arith.constant 0 : i32
    %c0_i32_0 = arith.constant 0 : i32
    %c0_i32_1 = arith.constant 0 : i32
    return %arg0, %c0_i32, %c0_i32_0 : i32, i32, i32
  }
}

</mosaic_0001>

<bundles_post_ra>
// kernel: tpu_custom_call.1
= control target key start
LH: loop header
LB: loop body
LE: loop exit
PB: predicated region body
PF: predicated region fallthrough
CT: control target
= control target key end

     0   :  { %v1876_v6 = vmov 0   ;;  %v147_v51 = vlaneseq  ;;  %vm414_vm0 = vcmask 523264   ;;  %vm532_vm1 = vcmask 785408   ;;  %s2678_s0 = inlined_call_operand.vmem [shape: f32[2,128,96], index: 0, kind: input, shape index: {}]   ;;  %s2679_s1 = inlined_call_operand.vmem [shape: bf16[128,192], index: 1, kind: input, shape index: {}]   ;;  %s2680_s2 = inlined_call_operand.vmem [shape: f32[1,192], index: 2, kind: input, shape index: {}]   ;;  %s2681_s3 = inlined_call_operand.vmem [shape: bf16[64,128], index: 3, kind: input, shape index: {}]   ;;  %s2682_s4 = inlined_call_operand.vmem [shape: f32[1,128], index: 4, kind: input, shape index: {}]   ;;  %s2683_s5 = inlined_call_operand.vmem [shape: f32[2,128,96], index: 5, kind: output, shape index: {}]  }
   0x1   :  { %v21_v0 = vld [vmem:[%s2678_s0] sm:$0xff]  ;;  %v22_v1 = vld [vmem:[%s2678_s0 + $0x8] sm:$0xff]  ;;  %v23_v2 = vld [vmem:[%s2678_s0 + $0x10] sm:$0xff]  ;;  %269 = vmatprep.mubr.bf16.mxu0 %v1876_v6 }
   0x2   :  { %53 = vxpose.xlu0.b32.start [1/16] (narrow) %v21_v0, 96  ;;  %v1752_v3 = vld [vmem:[%s2679_s1 + $0x4] ss:$8 sps:$4 sm:$0xff]   ;;  %v1754_v4 = vld [vmem:[%s2679_s1] ss:$8 sps:$4 sm:$0xff]   ;;  %v24_v8 = vld [vmem:[%s2678_s0 + $0x18] sm:$0xff] }
   0x3   :  { %v1755_v5 = vld [vmem:[%s2679_s1 + $0x14] ss:$8 sps:$4 sm:$0xff]   ;;  %237 = vmatprep.subr.bf16.mxu0 %v1752_v3  ;;  %v1757_v7 = vld [vmem:[%s2679_s1 + $0x10] ss:$8 sps:$4 sm:$0xff]   ;;  %v1758_v9 = vld [vmem:[%s2679_s1 + $0x24] ss:$8 sps:$4 sm:$0xff]  }
   0x4   :  { %238 = vmatpush1.bf16.msra.mxu0 %v1754_v4  ;;  %v1760_v10 = vld [vmem:[%s2679_s1 + $0x20] ss:$8 sps:$4 sm:$0xff]   ;;  %v1761_v12 = vld [vmem:[%s2679_s1 + $0x34] ss:$8 sps:$4 sm:$0xff]   ;;  %v1763_v13 = vld [vmem:[%s2679_s1 + $0x30] ss:$8 sps:$4 sm:$0xff]  }
   0x5   :  { %239 = vmatprep.subr.bf16.mxu0 %v1755_v5  ;;  %v25_v11 = vld [vmem:[%s2678_s0 + $0x20] sm:$0xff]  ;;  %v26_v14 = vld [vmem:[%s2678_s0 + $0x28] sm:$0xff]  ;;  %v27_v17 = vld [vmem:[%s2678_s0 + $0x30] sm:$0xff]  ;;  %v148_v52 = vshrl.u32 %v147_v51, 7 }
   0x6   :  { %54 = vxpose.xlu0.b32.cont [2/16] (narrow) %v22_v1, 96  ;;  %v1764_v15 = vld [vmem:[%s2679_s1 + $0x44] ss:$8 sps:$4 sm:$0xff]   ;;  %v1766_v16 = vld [vmem:[%s2679_s1 + $0x40] ss:$8 sps:$4 sm:$0xff]   ;;  %v28_v20 = vld [vmem:[%s2678_s0 + $0x38] sm:$0xff] }
   0x7   :  { %v1767_v18 = vld [vmem:[%s2679_s1 + $0x54] ss:$8 sps:$4 sm:$0xff]   ;;  %v1769_v19 = vld [vmem:[%s2679_s1 + $0x50] ss:$8 sps:$4 sm:$0xff]   ;;  %v1770_v21 = vld [vmem:[%s2679_s1 + $0x64] ss:$8 sps:$4 sm:$0xff]  }
   0x8   :  { %240 = vmatpush1.bf16.msra.mxu0 %v1757_v7  ;;  %v1772_v22 = vld [vmem:[%s2679_s1 + $0x60] ss:$8 sps:$4 sm:$0xff]   ;;  %v1773_v24 = vld [vmem:[%s2679_s1 + $0x74] ss:$8 sps:$4 sm:$0xff]   ;;  %v1775_v25 = vld [vmem:[%s2679_s1 + $0x70] ss:$8 sps:$4 sm:$0xff]  }
   0x9   :  { %241 = vmatprep.subr.bf16.mxu0 %v1758_v9  ;;  %v29_v23 = vld [vmem:[%s2678_s0 + $0x40] sm:$0xff]  ;;  %v30_v26 = vld [vmem:[%s2678_s0 + $0x48] sm:$0xff]  ;;  %v31_v27 = vld [vmem:[%s2678_s0 + $0x50] sm:$0xff]  ;;  %v149_v53 = vsub.s32 0, %v148_v52  ;;  %v153_v55 = vsub.s32 1, %v148_v52 }
   0xa   :  { %55 = vxpose.xlu0.b32.cont [3/16] (narrow) %v23_v2, 96  ;;  %v32_v28 = vld [vmem:[%s2678_s0 + $0x58] sm:$0xff]  ;;  %v33_v29 = vld [vmem:[%s2678_s0 + $0x60] sm:$0xff]  ;;  %v34_v30 = vld [vmem:[%s2678_s0 + $0x68] sm:$0xff] }
   0xb   :  { %v35_v31 = vld [vmem:[%s2678_s0 + $0x70] sm:$0xff]  ;;  %v36_v32 = vld [vmem:[%s2678_s0 + $0x78] sm:$0xff]  ;;  %v145_v54 = vld [vmem:[%s2680_s2] sm:$0x3]  ;;  %s1877_s2 = smov 64  }
   0xc   :  { %242 = vmatpush1.bf16.msra.mxu0 %v1760_v10  ;;  %v2014_v56 = vrot.slane %v145_v54, %v149_v53  ;;  %v2016_v58 = vrot.slane %v145_v54, %v153_v55  ;;  %v37_v55 = vld [vmem:[%s2678_s0 + $0x80] sm:$0xff] }
   0xd   :  { %243 = vmatprep.subr.bf16.mxu0 %v1761_v12 }
   0xe   :  { %56 = vxpose.xlu0.b32.cont [4/16] (narrow) %v24_v8, 96 }
  0x10   :  { %244 = vmatpush1.bf16.msra.mxu0 %v1763_v13 }
  0x11   :  { %245 = vmatprep.subr.bf16.mxu0 %v1764_v15 }
  0x12   :  { %57 = vxpose.xlu0.b32.cont [5/16] (narrow) %v25_v11, 96 }
  0x14   :  { %246 = vmatpush1.bf16.msra.mxu0 %v1766_v16 }
  0x15   :  { %247 = vmatprep.subr.bf16.mxu0 %v1767_v18 }
  0x16   :  { %58 = vxpose.xlu0.b32.cont [6/16] (narrow) %v26_v14, 96 }
  0x18   :  { %248 = vmatpush1.bf16.msra.mxu0 %v1769_v19 }
  0x19   :  { %249 = vmatprep.subr.bf16.mxu0 %v1770_v21 }
  0x1a   :  { %59 = vxpose.xlu0.b32.cont [7/16] (narrow) %v27_v17, 96 }
  0x1c   :  { %250 = vmatpush1.bf16.msra.mxu0 %v1772_v22 }
  0x1d   :  { %251 = vmatprep.subr.bf16.mxu0 %v1773_v24 }
  0x1e   :  { %60 = vxpose.xlu0.b32.cont [8/16] (narrow) %v28_v20, 96 }
  0x20   :  { %252 = vmatpush1.bf16.msra.mxu0 %v1775_v25 }
  0x22   :  { %61 = vxpose.xlu0.b32.cont [9/16] (narrow) %v29_v23, 96 }
  0x26   :  { %62 = vxpose.xlu0.b32.cont [10/16] (narrow) %v30_v26, 96 }
  0x2a   :  { %63 = vxpose.xlu0.b32.cont [11/16] (narrow) %v31_v27, 96 }
  0x2e   :  { %64 = vxpose.xlu0.b32.cont [12/16] (narrow) %v32_v28, 96 }
  0x32   :  { %65 = vxpose.xlu0.b32.cont [13/16] (narrow) %v33_v29, 96 }
  0x36   :  { %66 = vxpose.xlu0.b32.cont [14/16] (narrow) %v34_v30, 96 }
  0x3a   :  { %67 = vxpose.xlu0.b32.cont [15/16] (narrow) %v35_v31, 96 }
  0x3e   :  { %68 = vxpose.xlu0.b32.end [16/16] (narrow) %v36_v32, 96 }
  0x82   :  { %v69_v33 = vpop.trf.xlu0 }
  0x86   :  { %v70_v34 = vpop.trf.xlu0 }
  0x87   :  { %v117_v35 = vpack.c.bf16 %v70_v34, %v69_v33 }
  0x89   :  { %270 = vmatmul.mubr.bf16.vlgmr.msra.gmra.mrb[0].mxu0 %v117_v35 }
  0x8a   :  { %v71_v36 = vpop.trf.xlu0  ;;  %279 = vmatprep.mubr.bf16.mxu0 %v1876_v6 }
  0x8e   :  { %v72_v37 = vpop.trf.xlu0 }
  0x8f   :  { %v118_v38 = vpack.c.bf16 %v72_v37, %v71_v36 }
  0x91   :  { %280 = vmatmul.mubr.bf16.gmra.mrb[4].mxu0 %v118_v38 }
  0x92   :  { %v73_v39 = vpop.trf.xlu0  ;;  %289 = vmatprep.mubr.bf16.mxu0 %v1876_v6 }
  0x96   :  { %v74_v40 = vpop.trf.xlu0 }
  0x97   :  { %v119_v41 = vpack.c.bf16 %v74_v40, %v73_v39 }
  0x99   :  { %290 = vmatmul.mubr.bf16.gmra.mrb[8].mxu0 %v119_v41 }
  0x9a   :  { %v75_v42 = vpop.trf.xlu0  ;;  %299 = vmatprep.mubr.bf16.mxu0 %v1876_v6 }
  0x9e   :  { %v76_v43 = vpop.trf.xlu0 }
  0x9f   :  { %v120_v44 = vpack.c.bf16 %v76_v43, %v75_v42 }
  0xa1   :  { %300 = vmatmul.mubr.bf16.gmra.mrb[12].mxu0 %v120_v44 }
  0xa2   :  { %v77_v45 = vpop.trf.xlu0  ;;  %309 = vmatprep.mubr.bf16.mxu0 %v1876_v6 }
  0xa6   :  { %v78_v46 = vpop.trf.xlu0 }
  0xa7   :  { %v121_v47 = vpack.c.bf16 %v78_v46, %v77_v45 }
  0xa9   :  { %310 = vmatmul.mubr.bf16.gmra.mrb[16].mxu0 %v121_v47 }
  0xaa   :  { %v79_v48 = vpop.trf.xlu0  ;;  %319 = vmatprep.mubr.bf16.mxu0 %v1876_v6 }
  0xae   :  { %v80_v49 = vpop.trf.xlu0 }
  0xaf   :  { %v122_v50 = vpack.c.bf16 %v80_v49, %v79_v48 }
  0xb1   :  { %320 = vmatmul.mubr.bf16.gmra.mrb[20].mxu0 %v122_v50 }
  0xb2   :  { %329 = vmatprep.mubr.bf16.mxu0 %v1876_v6 }
 0x15c   :  { %v271_v57 = vpop.f32.mrb[0].mxu0 }
 0x15d   :  { %v273_v59 = vpop.f32.mrb[1].mxu0  ;;  %v272_v61 = vadd.f32 %v271_v57, %v2014_v56  ;;  %v38_v57 = vld [vmem:[%s2678_s0 + $0x88] sm:$0xff] }
 0x15e   :  { %v275_v60 = vpop.f32.mrb[2].mxu0  ;;  %v274_v0 = vadd.f32 %v273_v59, %v2016_v58  ;;  %v39_v59 = vld [vmem:[%s2678_s0 + $0x90] sm:$0xff] }
 0x15f   :  { %v276_v62 = vadd.f32 %v275_v60, %v2014_v56  ;;  %v277_v63 = vpop.f32.mrb[3].mxu0  ;;  %v40_v60 = vld [vmem:[%s2678_s0 + $0x98] sm:$0xff] }
 0x160   :  { %v278_v1 = vadd.f32 %v277_v63, %v2016_v58  ;;  %v43_v63 = vld [vmem:[%s2678_s0 + $0xb0] sm:$0xff] }
 0x161   :  { %v2022_v2 = vpack.c.bf16 %v276_v62, %v272_v61  ;;  %v41_v61 = vld [vmem:[%s2678_s0 + $0xa0] sm:$0xff]  ;;  %v42_v62 = vld [vmem:[%s2678_s0 + $0xa8] sm:$0xff] }
 0x162   :  { %v671_v3 = vpack.c.bf16 %v278_v1, %v274_v0  ;;  %v44_v0 = vld [vmem:[%s2678_s0 + $0xb8] sm:$0xff]  ;;  %v45_v1 = vld [vmem:[%s2678_s0 + $0xc0] sm:$0xff] }
 0x163   :  { %402 = vrot.lane.b32.xlu1 %v2022_v2, %s1877_s2 }
 0x164   :  { %v281_v4 = vpop.f32.mrb[4].mxu0  ;;  %1621 = vmatprep.subr.bf16.mxu1 %v671_v3 }
 0x165   :  { %v283_v5 = vpop.f32.mrb[5].mxu0  ;;  %1622 = vmatpush3.bf16.msra.mxu1 %v671_v3  ;;  %v282_v8 = vadd.f32 %v281_v4, %v2014_v56  ;;  %v46_v3 = vld [vmem:[%s2678_s0 + $0xc8] sm:$0xff]  ;;  %v47_v4 = vld [vmem:[%s2678_s0 + $0xd0] sm:$0xff] }
 0x166   :  { %v285_v7 = vpop.f32.mrb[6].mxu0  ;;  %v284_v11 = vadd.f32 %v283_v5, %v2016_v58  ;;  %v48_v5 = vld [vmem:[%s2678_s0 + $0xd8] sm:$0xff] }
 0x167   :  { %v286_v9 = vadd.f32 %v285_v7, %v2014_v56  ;;  %v287_v10 = vpop.f32.mrb[7].mxu0  ;;  %v49_v7 = vld [vmem:[%s2678_s0 + $0xe0] sm:$0xff] }
 0x168   :  { %v288_v12 = vadd.f32 %v287_v10, %v2016_v58 }
 0x169   :  { %v2030_v13 = vpack.c.bf16 %v286_v9, %v282_v8  ;;  %v50_v8 = vld [vmem:[%s2678_s0 + $0xe8] sm:$0xff]  ;;  %v51_v9 = vld [vmem:[%s2678_s0 + $0xf0] sm:$0xff] }
 0x16a   :  { %v672_v14 = vpack.c.bf16 %v288_v12, %v284_v11  ;;  %v52_v11 = vld [vmem:[%s2678_s0 + $0xf8] sm:$0xff] }
 0x16b   :  { %404 = vrot.lane.b32.xlu1 %v2030_v13, %s1877_s2 }
 0x16c   :  { %v291_v15 = vpop.f32.mrb[8].mxu0  ;;  %1623 = vmatprep.subr.bf16.mxu1 %v672_v14 }
 0x16d   :  { %v293_v16 = vpop.f32.mrb[9].mxu0  ;;  %1624 = vmatpush3.bf16.msra.mxu1 %v672_v14  ;;  %v292_v18 = vadd.f32 %v291_v15, %v2014_v56 }
 0x16e   :  { %v295_v17 = vpop.f32.mrb[10].mxu0  ;;  %v294_v21 = vadd.f32 %v293_v16, %v2016_v58 }
 0x16f   :  { %v296_v19 = vadd.f32 %v295_v17, %v2014_v56  ;;  %v297_v20 = vpop.f32.mrb[11].mxu0 }
 0x170   :  { %v298_v22 = vadd.f32 %v297_v20, %v2016_v58 }
 0x171   :  { %v2038_v23 = vpack.c.bf16 %v296_v19, %v292_v18 }
 0x172   :  { %v673_v24 = vpack.c.bf16 %v298_v22, %v294_v21 }
 0x173   :  { %406 = vrot.lane.b32.xlu1 %v2038_v23, %s1877_s2 }
 0x174   :  { %1625 = vmatprep.subr.bf16.mxu1 %v673_v24  ;;  %v301_v25 = vpop.f32.mrb[12].mxu0 }
 0x175   :  { %1626 = vmatpush3.bf16.msra.mxu1 %v673_v24  ;;  %v302_v26 = vadd.f32 %v301_v25, %v2014_v56  ;;  %v303_v27 = vpop.f32.mrb[13].mxu0 }
 0x176   :  { %v304_v28 = vadd.f32 %v303_v27, %v2016_v58  ;;  %v305_v29 = vpop.f32.mrb[14].mxu0 }
 0x177   :  { %v306_v30 = vadd.f32 %v305_v29, %v2014_v56  ;;  %v307_v31 = vpop.f32.mrb[15].mxu0 }
 0x178   :  { %v308_v32 = vadd.f32 %v307_v31, %v2016_v58 }
 0x179   :  { %v2046_v33 = vpack.c.bf16 %v306_v30, %v302_v26 }
 0x17a   :  { %v674_v34 = vpack.c.bf16 %v308_v32, %v304_v28 }
 0x17b   :  { %408 = vrot.lane.b32.xlu0 %v2046_v33, %s1877_s2 }
 0x17c   :  { %1627 = vmatprep.subr.bf16.mxu1 %v674_v34  ;;  %v311_v35 = vpop.f32.mrb[16].mxu0 }
 0x17d   :  { %1628 = vmatpush3.bf16.msra.mxu1 %v674_v34  ;;  %v312_v36 = vadd.f32 %v311_v35, %v2014_v56  ;;  %v313_v37 = vpop.f32.mrb[17].mxu0 }
 0x17e   :  { %v314_v38 = vadd.f32 %v313_v37, %v2016_v58  ;;  %v315_v39 = vpop.f32.mrb[18].mxu0 }
 0x17f   :  { %v316_v40 = vadd.f32 %v315_v39, %v2014_v56  ;;  %v317_v41 = vpop.f32.mrb[19].mxu0 }
 0x180   :  { %v318_v42 = vadd.f32 %v317_v41, %v2016_v58 }
 0x181   :  { %v2054_v43 = vpack.c.bf16 %v316_v40, %v312_v36 }
 0x182   :  { %v675_v44 = vpack.c.bf16 %v318_v42, %v314_v38 }
 0x183   :  { %410 = vrot.lane.b32.xlu0 %v2054_v43, %s1877_s2 }
 0x184   :  { %1629 = vmatprep.subr.bf16.mxu1 %v675_v44  ;;  %v321_v45 = vpop.f32.mrb[20].mxu0 }
 0x185   :  { %1630 = vmatpush3.bf16.msra.mxu1 %v675_v44  ;;  %v322_v46 = vadd.f32 %v321_v45, %v2014_v56  ;;  %v323_v47 = vpop.f32.mrb[21].mxu0 }
 0x186   :  { %v324_v48 = vadd.f32 %v323_v47, %v2016_v58  ;;  %v325_v49 = vpop.f32.mrb[22].mxu0 }
 0x187   :  { %v326_v50 = vadd.f32 %v325_v49, %v2014_v56  ;;  %v327_v51 = vpop.f32.mrb[23].mxu0 }
 0x188   :  { %v328_v52 = vadd.f32 %v327_v51, %v2016_v58 }
 0x189   :  { %v2062_v53 = vpack.c.bf16 %v326_v50, %v322_v46 }
 0x18a   :  { %v676_v54 = vpack.c.bf16 %v328_v52, %v324_v48 }
 0x18b   :  { %412 = vrot.lane.b32.xlu0 %v2062_v53, %s1877_s2 }
 0x18c   :  { %1631 = vmatprep.subr.bf16.mxu1 %v676_v54 }
 0x18d   :  { %1632 = vmatpush3.bf16.msra.mxu1 %v676_v54 }
 0x19c   :  { %85 = vxpose.xlu1.b32.start [1/16] (narrow) %v37_v55, 96 }
 0x1a0   :  { %86 = vxpose.xlu1.b32.cont [2/16] (narrow) %v38_v57, 96 }
 0x1a4   :  { %87 = vxpose.xlu1.b32.cont [3/16] (narrow) %v39_v59, 96 }
 0x1a8   :  { %88 = vxpose.xlu1.b32.cont [4/16] (narrow) %v40_v60, 96 }
 0x1ac   :  { %89 = vxpose.xlu1.b32.cont [5/16] (narrow) %v41_v61, 96 }
 0x1b0   :  { %90 = vxpose.xlu1.b32.cont [6/16] (narrow) %v42_v62, 96 }
 0x1b4   :  { %91 = vxpose.xlu1.b32.cont [7/16] (narrow) %v43_v63, 96 }
 0x1b8   :  { %92 = vxpose.xlu1.b32.cont [8/16] (narrow) %v44_v0, 96 }
 0x1bc   :  { %93 = vxpose.xlu1.b32.cont [9/16] (narrow) %v45_v1, 96 }
 0x1c0   :  { %94 = vxpose.xlu1.b32.cont [10/16] (narrow) %v46_v3, 96 }
 0x1c4   :  { %95 = vxpose.xlu1.b32.cont [11/16] (narrow) %v47_v4, 96 }
 0x1c8   :  { %96 = vxpose.xlu1.b32.cont [12/16] (narrow) %v48_v5, 96 }
 0x1cc   :  { %97 = vxpose.xlu1.b32.cont [13/16] (narrow) %v49_v7, 96 }
 0x1d0   :  { %98 = vxpose.xlu1.b32.cont [14/16] (narrow) %v50_v8, 96 }
 0x1d4   :  { %99 = vxpose.xlu1.b32.cont [15/16] (narrow) %v51_v9, 96 }
 0x1d5   :  { %v403_v10 = vpop.permute.xlu1 %402 }
 0x1d6   :  { %v434_v12 = vsel %vm414_vm0, %v403_v10, 0  ;;  %1737 = vmatprep.subr.msk.bf16.mxu0 %vm414_vm0, %v403_v10 }
 0x1d7   :  { %1598 = vmatpush3.bf16.xpose.msra.mxu0 %v434_v12 }
 0x1d8   :  { %100 = vxpose.xlu1.b32.end [16/16] (narrow) %v52_v11, 96 }
 0x1dd   :  { %v405_v14 = vpop.permute.xlu1 %404 }
 0x1de   :  { %v437_v15 = vsel %vm414_vm0, %v405_v14, 0  ;;  %1738 = vmatprep.subr.msk.bf16.mxu0 %vm414_vm0, %v405_v14 }
 0x1df   :  { %1600 = vmatpush3.bf16.xpose.msra.mxu0 %v437_v15 }
 0x1e5   :  { %v407_v16 = vpop.permute.xlu1 %406 }
 0x1e6   :  { %v440_v17 = vsel %vm414_vm0, %v407_v16, 0  ;;  %1739 = vmatprep.subr.msk.bf16.mxu0 %vm414_vm0, %v407_v16 }
 0x1e7   :  { %1602 = vmatpush3.bf16.xpose.msra.mxu0 %v440_v17 }
 0x1ed   :  { %v409_v18 = vpop.permute.xlu0 %408 }
 0x1ee   :  { %v443_v19 = vsel %vm414_vm0, %v409_v18, 0  ;;  %1740 = vmatprep.subr.msk.bf16.mxu0 %vm414_vm0, %v409_v18 }
 0x1ef   :  { %1604 = vmatpush3.bf16.xpose.msra.mxu0 %v443_v19 }
 0x1f5   :  { %v411_v20 = vpop.permute.xlu0 %410 }
 0x1f6   :  { %v446_v21 = vsel %vm414_vm0, %v411_v20, 0  ;;  %1741 = vmatprep.subr.msk.bf16.mxu0 %vm414_vm0, %v411_v20 }
 0x1f7   :  { %1606 = vmatpush3.bf16.xpose.msra.mxu0 %v446_v21 }
 0x1fd   :  { %v413_v22 = vpop.permute.xlu0 %412 }
 0x1fe   :  { %v449_v24 = vsel %vm414_vm0, %v413_v22, 0  ;;  %1742 = vmatprep.subr.msk.bf16.mxu0 %vm414_vm0, %v413_v22 }
 0x1ff   :  { %1608 = vmatpush3.bf16.xpose.msra.mxu0 %v449_v24 }
 0x21c   :  { %v101_v25 = vpop.trf.xlu1 }
 0x220   :  { %v102_v26 = vpop.trf.xlu1 }
 0x221   :  { %v123_v27 = vpack.c.bf16 %v102_v26, %v101_v25 }
 0x223   :  { %330 = vmatmul.mubr.bf16.gmra.mrb[24].mxu0 %v123_v27 }
 0x224   :  { %v103_v28 = vpop.trf.xlu1  ;;  %339 = vmatprep.mubr.bf16.mxu0 %v1876_v6 }
 0x228   :  { %v104_v29 = vpop.trf.xlu1 }
 0x229   :  { %v124_v30 = vpack.c.bf16 %v104_v29, %v103_v28 }
 0x22b   :  { %340 = vmatmul.mubr.bf16.gmra.mrb[28].mxu0 %v124_v30 }
 0x22c   :  { %v105_v31 = vpop.trf.xlu1  ;;  %349 = vmatprep.mubr.bf16.mxu0 %v1876_v6 }
 0x230   :  { %v106_v32 = vpop.trf.xlu1 }
 0x231   :  { %v125_v34 = vpack.c.bf16 %v106_v32, %v105_v31 }
 0x233   :  { %350 = vmatmul.mubr.bf16.gmra.mrb[32].mxu0 %v125_v34 }
 0x234   :  { %v107_v35 = vpop.trf.xlu1  ;;  %359 = vmatprep.mubr.bf16.mxu0 %v1876_v6 }
 0x238   :  { %v108_v36 = vpop.trf.xlu1 }
 0x239   :  { %v126_v37 = vpack.c.bf16 %v108_v36, %v107_v35 }
 0x23b   :  { %360 = vmatmul.mubr.bf16.gmra.mrb[36].mxu0 %v126_v37 }
 0x23c   :  { %v109_v38 = vpop.trf.xlu1  ;;  %369 = vmatprep.mubr.bf16.mxu0 %v1876_v6 }
 0x240   :  { %v110_v39 = vpop.trf.xlu1 }
 0x241   :  { %v127_v40 = vpack.c.bf16 %v110_v39, %v109_v38 }
 0x243   :  { %370 = vmatmul.mubr.bf16.gmra.mrb[40].mxu0 %v127_v40 }
 0x244   :  { %v111_v41 = vpop.trf.xlu1  ;;  %379 = vmatprep.mubr.bf16.mxu0 %v1876_v6 }
 0x248   :  { %v112_v42 = vpop.trf.xlu1 }
 0x249   :  { %v128_v44 = vpack.c.bf16 %v112_v42, %v111_v41 }
 0x24b   :  { %380 = vmatmul.mubr.bf16.gmra.mrb[44].mxu0 %v128_v44 }
 0x24c   :  { %1609 = vmatprep.mubr.msk.bf16.mxu0 %vm414_vm0, %v2022_v2 }
 0x253   :  { %1610 = vmatmul.mubr.msk.bf16.vlgmr.msra.gmra.mrb[48].mxu0 %vm414_vm0, %v2030_v13 }
 0x254   :  { %1613 = vmatprep.mubr.msk.bf16.mxu0 %vm414_vm0, %v2038_v23 }
 0x25b   :  { %1614 = vmatmul.mubr.msk.bf16.gmra.mrb[52].mxu0 %vm414_vm0, %v2046_v33 }
 0x25c   :  { %1617 = vmatprep.mubr.msk.bf16.mxu0 %vm414_vm0, %v2054_v43 }
 0x263   :  { %1618 = vmatmul.mubr.msk.bf16.gmra.mrb[56].mxu0 %vm414_vm0, %v2062_v53 }
 0x2f6   :  { %v331_v6 = vpop.f32.mrb[24].mxu0 }
 0x2f7   :  { %v333_v45 = vpop.f32.mrb[25].mxu0  ;;  %v332_v2 = vadd.f32 %v331_v6, %v2014_v56 }
 0x2f8   :  { %v335_v46 = vpop.f32.mrb[26].mxu0  ;;  %v334_v48 = vadd.f32 %v333_v45, %v2016_v58 }
 0x2f9   :  { %v336_v47 = vadd.f32 %v335_v46, %v2014_v56  ;;  %v337_v13 = vpop.f32.mrb[27].mxu0 }
 0x2fa   :  { %v338_v23 = vadd.f32 %v337_v13, %v2016_v58 }
 0x2fb   :  { %v2147_v49 = vpack.c.bf16 %v336_v47, %v332_v2 }
 0x2fc   :  { %v2149_v33 = vpack.c.bf16 %v338_v23, %v334_v48 }
 0x2fe   :  { %v341_v43 = vpop.f32.mrb[28].mxu0  ;;  %1669 = vmatprep.subr.bf16.mxu0 %v2149_v33 }
 0x2ff   :  { %v343_v50 = vpop.f32.mrb[29].mxu0  ;;  %1670 = vmatpush3.bf16.msra.mxu0 %v2149_v33  ;;  %v342_v52 = vadd.f32 %v341_v43, %v2014_v56 }
 0x300   :  { %v345_v51 = vpop.f32.mrb[30].mxu0  ;;  %v344_v55 = vadd.f32 %v343_v50, %v2016_v58 }
 0x301   :  { %v346_v53 = vadd.f32 %v345_v51, %v2014_v56  ;;  %v347_v54 = vpop.f32.mrb[31].mxu0 }
 0x302   :  { %v348_v57 = vadd.f32 %v347_v54, %v2016_v58 }
 0x303   :  { %v2157_v59 = vpack.c.bf16 %v346_v53, %v342_v52 }
 0x304   :  { %v2159_v60 = vpack.c.bf16 %v348_v57, %v344_v55 }
 0x306   :  { %v351_v61 = vpop.f32.mrb[32].mxu0  ;;  %1671 = vmatprep.subr.bf16.mxu0 %v2159_v60 }
 0x307   :  { %v353_v62 = vpop.f32.mrb[33].mxu0  ;;  %1672 = vmatpush3.bf16.msra.mxu0 %v2159_v60  ;;  %v352_v0 = vadd.f32 %v351_v61, %v2014_v56 }
 0x308   :  { %v355_v63 = vpop.f32.mrb[34].mxu0  ;;  %v354_v4 = vadd.f32 %v353_v62, %v2016_v58 }
 0x309   :  { %v356_v1 = vadd.f32 %v355_v63, %v2014_v56  ;;  %v357_v3 = vpop.f32.mrb[35].mxu0 }
 0x30a   :  { %v358_v5 = vadd.f32 %v357_v3, %v2016_v58 }
 0x30b   :  { %v2167_v7 = vpack.c.bf16 %v356_v1, %v352_v0 }
 0x30c   :  { %v2169_v8 = vpack.c.bf16 %v358_v5, %v354_v4 }
 0x30e   :  { %v361_v9 = vpop.f32.mrb[36].mxu0  ;;  %1673 = vmatprep.subr.bf16.mxu0 %v2169_v8 }
 0x30f   :  { %v363_v10 = vpop.f32.mrb[37].mxu0  ;;  %1674 = vmatpush3.bf16.msra.mxu0 %v2169_v8  ;;  %v362_v12 = vadd.f32 %v361_v9, %v2014_v56 }
 0x310   :  { %v365_v11 = vpop.f32.mrb[38].mxu0  ;;  %v364_v16 = vadd.f32 %v363_v10, %v2016_v58 }
 0x311   :  { %v366_v14 = vadd.f32 %v365_v11, %v2014_v56  ;;  %v367_v15 = vpop.f32.mrb[39].mxu0 }
 0x312   :  { %v368_v17 = vadd.f32 %v367_v15, %v2016_v58 }
 0x313   :  { %v2177_v18 = vpack.c.bf16 %v366_v14, %v362_v12 }
 0x314   :  { %v2179_v19 = vpack.c.bf16 %v368_v17, %v364_v16 }
 0x316   :  { %v371_v20 = vpop.f32.mrb[40].mxu0  ;;  %1675 = vmatprep.subr.bf16.mxu0 %v2179_v19 }
 0x317   :  { %v373_v21 = vpop.f32.mrb[41].mxu0  ;;  %1676 = vmatpush3.bf16.msra.mxu0 %v2179_v19  ;;  %v372_v24 = vadd.f32 %v371_v20, %v2014_v56 }
 0x318   :  { %v375_v22 = vpop.f32.mrb[42].mxu0  ;;  %v374_v27 = vadd.f32 %v373_v21, %v2016_v58 }
 0x319   :  { %v376_v25 = vadd.f32 %v375_v22, %v2014_v56  ;;  %v377_v26 = vpop.f32.mrb[43].mxu0 }
 0x31a   :  { %v378_v28 = vadd.f32 %v377_v26, %v2016_v58 }
 0x31b   :  { %v2187_v29 = vpack.c.bf16 %v376_v25, %v372_v24 }
 0x31c   :  { %v2189_v30 = vpack.c.bf16 %v378_v28, %v374_v27 }
 0x31e   :  { %v381_v31 = vpop.f32.mrb[44].mxu0  ;;  %1677 = vmatprep.subr.bf16.mxu0 %v2189_v30 }
 0x31f   :  { %v383_v32 = vpop.f32.mrb[45].mxu0  ;;  %1678 = vmatpush3.bf16.msra.mxu0 %v2189_v30  ;;  %v382_v35 = vadd.f32 %v381_v31, %v2014_v56 }
 0x320   :  { %v385_v34 = vpop.f32.mrb[46].mxu0  ;;  %v384_v38 = vadd.f32 %v383_v32, %v2016_v58 }
 0x321   :  { %v386_v36 = vadd.f32 %v385_v34, %v2014_v56  ;;  %v387_v37 = vpop.f32.mrb[47].mxu0 }
 0x322   :  { %v388_v39 = vadd.f32 %v387_v37, %v2016_v58 }
 0x323   :  { %v2197_v40 = vpack.c.bf16 %v386_v36, %v382_v35 }
 0x324   :  { %v2199_v41 = vpack.c.bf16 %v388_v39, %v384_v38 }
 0x326   :  { %v1611_v42 = vpop.f32.mrb[48].mxu0  ;;  %1679 = vmatprep.subr.bf16.mxu0 %v2199_v41 }
 0x327   :  { %v485_v44 = vpop.f32.mrb[49].mxu0  ;;  %1680 = vmatpush3.bf16.msra.mxu0 %v2199_v41  ;;  %v539_v6 = vsel %vm532_vm1, %v1611_v42, -inf }
 0x328   :  { %540 = vmax.xlane.f32.xlu0 %v539_v6  ;;  %v1612_v56 = vpop.f32.mrb[50].mxu0  ;;  %v533_v58 = vsel %vm532_vm1, %v485_v44, -inf }
 0x329   :  { %v488_v45 = vpop.f32.mrb[51].mxu0  ;;  %v542_v13 = vsel %vm532_vm1, %v1612_v56, -inf }
 0x32a   :  { %v536_v46 = vsel %vm532_vm1, %v488_v45, -inf }
 0x32b   :  { %537 = vmax.xlane.f32.xlu1 %v536_v46 }
 0x32c   :  { %534 = vmax.xlane.f32.xlu0 %v533_v58 }
 0x32e   :  { %v2206_v2 = vpop.f32.mrb[52].mxu0 }
 0x32f   :  { %v2208_v47 = vpop.f32.mrb[53].mxu0  ;;  %v551_v50 = vsel %vm532_vm1, %v2206_v2, -inf }
 0x330   :  { %543 = vmax.xlane.f32.xlu0 %v542_v13  ;;  %v2211_v48 = vpop.f32.mrb[54].mxu0  ;;  %v545_v54 = vsel %vm532_vm1, %v2208_v47, -inf }
 0x331   :  { %v2213_v23 = vpop.f32.mrb[55].mxu0  ;;  %v554_v43 = vsel %vm532_vm1, %v2211_v48, -inf }
 0x332   :  { %555 = vmax.xlane.f32.xlu1 %v554_v43  ;;  %v548_v51 = vsel %vm532_vm1, %v2213_v23, -inf }
 0x334   :  { %552 = vmax.xlane.f32.xlu0 %v551_v50 }
 0x336   :  { %549 = vmax.xlane.f32.xlu1 %v548_v51  ;;  %v1619_v52 = vpop.f32.mrb[56].mxu0 }
 0x337   :  { %v517_v53 = vpop.f32.mrb[57].mxu0  ;;  %v563_v62 = vsel %vm532_vm1, %v1619_v52, -inf }
 0x338   :  { %546 = vmax.xlane.f32.xlu0 %v545_v54  ;;  %v1620_v55 = vpop.f32.mrb[58].mxu0  ;;  %v557_v0 = vsel %vm532_vm1, %v517_v53, -inf }
 0x339   :  { %v2223_v57 = vpop.f32.mrb[59].mxu0  ;;  %v566_v61 = vsel %vm532_vm1, %v1620_v55, -inf }
 0x33a   :  { %567 = vmax.xlane.f32.xlu1 %v566_v61  ;;  %v560_v63 = vsel %vm532_vm1, %v2223_v57, -inf }
 0x33c   :  { %564 = vmax.xlane.f32.xlu0 %v563_v62 }
 0x33e   :  { %561 = vmax.xlane.f32.xlu1 %v560_v63 }
 0x340   :  { %558 = vmax.xlane.f32.xlu0 %v557_v0 }
 0x34f   :  { %790 = vrot.lane.b32.xlu1 %v2157_v59, %s1877_s2 }
 0x356   :  { %788 = vrot.lane.b32.xlu0 %v2147_v49, %s1877_s2 }
 0x3b5   :  { %v541_v1 = vpop.xlane.xlu0 %540 }
 0x3b6   :  { %v571_v3 = vsub.f32 %v1611_v42, %v541_v1 }
 0x3b8   :  { %v585_v4 = vmul.f32 1.442695, %v571_v3  ;;  %v538_v5 = vpop.xlane.xlu1 %537 }
 0x3b9   :  { %v535_v9 = vpop.xlane.xlu0 %534  ;;  %v570_v11 = vsub.f32 %v488_v45, %v538_v5 }
 0x3ba   :  { %1780 = vpow2.f32 %v585_v4  ;;  %v569_v10 = vsub.f32 %v485_v44, %v535_v9 }
 0x3bb   :  { %v583_v16 = vmul.f32 1.442695, %v570_v11 }
 0x3bc   :  { %v581_v12 = vmul.f32 1.442695, %v569_v10 }
 0x3bd   :  { %v544_v14 = vpop.xlane.xlu0 %543 }
 0x3be   :  { %1782 = vpow2.f32 %v581_v12  ;;  %v572_v15 = vsub.f32 %v1612_v56, %v544_v14 }
 0x3bf   :  { %v556_v37 = vpop.xlane.xlu1 %555 }
 0x3c0   :  { %v587_v17 = vmul.f32 1.442695, %v572_v15  ;;  %v576_v50 = vsub.f32 %v2211_v48, %v556_v37 }
 0x3c1   :  { %v553_v20 = vpop.xlane.xlu0 %552 }
 0x3c2   :  { %1784 = vpow2.f32 %v587_v17  ;;  %v575_v56 = vsub.f32 %v2206_v2, %v553_v20 }
 0x3c3   :  { %1786 = vpow2.f32 %v583_v16  ;;  %v550_v38 = vpop.xlane.xlu1 %549 }
 0x3c4   :  { %v2234_v21 = vpop.eup %1780  ;;  %v593_v58 = vmul.f32 1.442695, %v575_v56 }
 0x3c5   :  { %v547_v22 = vpop.xlane.xlu0 %546  ;;  %v611_v24 = vsel %vm532_vm1, %v2234_v21, 0.0 }
 0x3c6   :  { %612 = vadd.xlane.f32.xlu0 %v611_v24  ;;  %v573_v13 = vsub.f32 %v2208_v47, %v547_v22 }
 0x3c7   :  { %v568_v6 = vpop.xlane.xlu1 %567 }
 0x3c8   :  { %v2238_v25 = vpop.eup %1782  ;;  %v580_v45 = vsub.f32 %v1620_v55, %v568_v6  ;;  %v589_v51 = vmul.f32 1.442695, %v573_v13 }
 0x3c9   :  { %v565_v26 = vpop.xlane.xlu0 %564  ;;  %v605_v27 = vsel %vm532_vm1, %v2238_v25, 0.0 }
 0x3ca   :  { %606 = vadd.xlane.f32.xlu0 %v605_v27  ;;  %v579_v39 = vsub.f32 %v1619_v52, %v565_v26  ;;  %v603_v43 = vmul.f32 1.442695, %v580_v45  ;;  %v595_v52 = vmul.f32 1.442695, %v576_v50 }
 0x3cb   :  { %v562_v2 = vpop.xlane.xlu1 %561 }
 0x3cc   :  { %v2242_v28 = vpop.eup %1784  ;;  %v601_v42 = vmul.f32 1.442695, %v579_v39  ;;  %v578_v62 = vsub.f32 %v2223_v57, %v562_v2 }
 0x3cd   :  { %v559_v31 = vpop.xlane.xlu0 %558  ;;  %v614_v32 = vsel %vm532_vm1, %v2242_v28, 0.0  ;;  %v2246_v34 = vpop.eup %1786 }
 0x3ce   :  { %615 = vadd.xlane.f32.xlu1 %v614_v32  ;;  %v608_v36 = vsel %vm532_vm1, %v2246_v34, 0.0  ;;  %v577_v44 = vsub.f32 %v517_v53, %v559_v31  ;;  %1788 = vpow2.f32 %v601_v42  ;;  %v574_v53 = vsub.f32 %v2213_v23, %v550_v38 }
 0x3cf   :  { %v599_v23 = vmul.f32 1.442695, %v578_v62  ;;  %v791_v16 = vpop.permute.xlu1 %790 }
 0x3d0   :  { %v597_v46 = vmul.f32 1.442695, %v577_v44  ;;  %v591_v47 = vmul.f32 1.442695, %v574_v53 }
 0x3d1   :  { %v2248_v35 = vpop.permute.xlu0 %788 }
 0x3d2   :  { %1743 = vmatprep.subr.msk.bf16.mxu1 %vm414_vm0, %v2248_v35  ;;  %609 = vadd.xlane.f32.xlu1 %v608_v36  ;;  %1790 = vpow2.f32 %v597_v46  ;;  %v819_v44 = vsel %vm414_vm0, %v2248_v35, 0 }
 0x3d3   :  { %1792 = vpow2.f32 %v593_v58 }
 0x3d4   :  { %1794 = vpow2.f32 %v603_v43 }
 0x3d5   :  { %1796 = vpow2.f32 %v589_v51 }
 0x3d6   :  { %1798 = vpow2.f32 %v595_v52 }
 0x3d7   :  { %1800 = vpow2.f32 %v591_v47 }
 0x3d8   :  { %v2261_v54 = vpop.eup %1788  ;;  %1802 = vpow2.f32 %v599_v23 }
 0x3d9   :  { %v635_v55 = vsel %vm532_vm1, %v2261_v54, 0.0 }
 0x3dc   :  { %v2266_v61 = vpop.eup %1790 }
 0x3dd   :  { %v2269_v48 = vpop.eup %1792  ;;  %v629_v63 = vsel %vm532_vm1, %v2266_v61, 0.0 }
 0x3de   :  { %v2273_v0 = vpop.eup %1794  ;;  %v623_v3 = vsel %vm532_vm1, %v2269_v48, 0.0 }
 0x3df   :  { %v638_v1 = vsel %vm532_vm1, %v2273_v0, 0.0  ;;  %v2279_v4 = vpop.eup %1796 }
 0x3e0   :  { %792 = vrot.lane.b32.xlu0 %v2167_v7, %s1877_s2  ;;  %v617_v57 = vsel %vm532_vm1, %v2279_v4, 0.0  ;;  %v2283_v5 = vpop.eup %1798 }
 0x3e1   :  { %v626_v9 = vsel %vm532_vm1, %v2283_v5, 0.0  ;;  %v2287_v10 = vpop.eup %1800 }
 0x3e2   :  { %v620_v11 = vsel %vm532_vm1, %v2287_v10, 0.0  ;;  %v2291_v12 = vpop.eup %1802 }
 0x3e3   :  { %794 = vrot.lane.b32.xlu1 %v2177_v18, %s1877_s2  ;;  %v632_v14 = vsel %vm532_vm1, %v2291_v12, 0.0 }
 0x3ff   :  { %636 = vadd.xlane.f32.xlu0 %v635_v55 }
 0x403   :  { %630 = vadd.xlane.f32.xlu0 %v629_v63 }
 0x407   :  { %639 = vadd.xlane.f32.xlu0 %v638_v1  ;;  %624 = vadd.xlane.f32.xlu1 %v623_v3 }
 0x40b   :  { %618 = vadd.xlane.f32.xlu1 %v617_v57 }
 0x40f   :  { %627 = vadd.xlane.f32.xlu1 %v626_v9 }
 0x413   :  { %621 = vadd.xlane.f32.xlu1 %v620_v11 }
 0x417   :  { %633 = vadd.xlane.f32.xlu1 %v632_v14 }
 0x41d   :  { %796 = vrot.lane.b32.xlu0 %v2187_v29, %s1877_s2 }
 0x428   :  { %798 = vrot.lane.b32.xlu1 %v2197_v40, %s1877_s2 }
 0x453   :  { %v613_v15 = vpop.xlane.xlu0 %612 }
 0x457   :  { %v607_v17 = vpop.xlane.xlu0 %606 }
 0x45b   :  { %v616_v20 = vpop.xlane.xlu1 %615  ;;  %v793_v6 = vpop.permute.xlu0 %792 }
 0x45c   :  { %1804 = vrcp.f32 %v616_v20 }
 0x45d   :  { %1806 = vrcp.f32 %v607_v17 }
 0x45e   :  { %1808 = vrcp.f32 %v613_v15 }
 0x45f   :  { %v610_v22 = vpop.xlane.xlu1 %609 }
 0x460   :  { %1810 = vrcp.f32 %v610_v22 }
 0x466   :  { %v1805_v24 = vpop.eup %1804 }
 0x467   :  { %v1807_v26 = vpop.eup %1806  ;;  %v656_v32 = vmul.f32 %v1805_v24, %v2242_v28  ;;  %v822_v28 = vsel %vm414_vm0, %v791_v16, 0 }
 0x468   :  { %v1809_v27 = vpop.eup %1808  ;;  %v653_v36 = vmul.f32 %v1807_v26, %v2238_v25  ;;  %v795_v25 = vpop.permute.xlu1 %794 }
 0x469   :  { %v655_v38 = vmul.f32 %v1809_v27, %v2234_v21  ;;  %v825_v21 = vsel %vm414_vm0, %v793_v6, 0 }
 0x46a   :  { %v1811_v31 = vpop.eup %1810 }
 0x46b   :  { %v654_v37 = vmul.f32 %v1811_v31, %v2246_v34  ;;  %v666_v42 = vpack.c.bf16 %v656_v32, %v655_v38  ;;  %v828_v34 = vsel %vm414_vm0, %v795_v25, 0 }
 0x46d   :  { %v665_v39 = vpack.c.bf16 %v654_v37, %v653_v36 }
 0x46f   :  { %1633 = vmatprep.mubr.msk.bf16.mxu1 %vm532_vm1, %v665_v39 }
 0x470   :  { %1634 = vmatmul.mubr.msk.bf16.vlgmr.msra.gmra.mrb[0].mxu1 %vm532_vm1, %v666_v42 }
 0x471   :  { %1646 = vmatpush3.bf16.xpose.msra.mxu1 %v819_v44 }
 0x472   :  { %1744 = vmatprep.subr.msk.bf16.mxu1 %vm414_vm0, %v791_v16 }
 0x479   :  { %1648 = vmatpush3.bf16.xpose.msra.mxu1 %v822_v28 }
 0x47a   :  { %1745 = vmatprep.subr.msk.bf16.mxu1 %vm414_vm0, %v793_v6 }
 0x481   :  { %1650 = vmatpush3.bf16.xpose.msra.mxu1 %v825_v21 }
 0x482   :  { %1746 = vmatprep.subr.msk.bf16.mxu1 %vm414_vm0, %v795_v25 }
 0x489   :  { %1652 = vmatpush3.bf16.xpose.msra.mxu1 %v828_v34 }
 0x48c   :  { %v637_v35 = vpop.xlane.xlu0 %636 }
 0x490   :  { %v631_v56 = vpop.xlane.xlu0 %630 }
 0x494   :  { %v640_v45 = vpop.xlane.xlu0 %639  ;;  %v625_v46 = vpop.xlane.xlu1 %624 }
 0x498   :  { %v797_v58 = vpop.permute.xlu0 %796  ;;  %v619_v13 = vpop.xlane.xlu1 %618 }
 0x499   :  { %v831_v43 = vsel %vm414_vm0, %v797_v58, 0  ;;  %1747 = vmatprep.subr.msk.bf16.mxu1 %vm414_vm0, %v797_v58 }
 0x49a   :  { %1654 = vmatpush3.bf16.xpose.msra.mxu1 %v831_v43 }
 0x49c   :  { %v628_v50 = vpop.xlane.xlu1 %627 }
 0x49d   :  { %1812 = vrcp.f32 %v628_v50 }
 0x49e   :  { %1814 = vrcp.f32 %v619_v13 }
 0x49f   :  { %1816 = vrcp.f32 %v625_v46 }
 0x4a0   :  { %v622_v51 = vpop.xlane.xlu1 %621 }
 0x4a1   :  { %1818 = vrcp.f32 %v622_v51 }
 0x4a2   :  { %1820 = vrcp.f32 %v631_v56 }
 0x4a4   :  { %v634_v52 = vpop.xlane.xlu1 %633 }
 0x4a5   :  { %1822 = vrcp.f32 %v634_v52 }
 0x4a6   :  { %1824 = vrcp.f32 %v640_v45 }
 0x4a7   :  { %v1813_v53 = vpop.eup %1812  ;;  %1826 = vrcp.f32 %v637_v35 }
 0x4a8   :  { %v799_v2 = vpop.permute.xlu1 %798  ;;  %v1815_v55 = vpop.eup %1814  ;;  %v660_v23 = vmul.f32 %v1813_v53, %v2283_v5 }
 0x4a9   :  { %v834_v47 = vsel %vm414_vm0, %v799_v2, 0  ;;  %1748 = vmatprep.subr.msk.bf16.mxu1 %vm414_vm0, %v799_v2  ;;  %v1817_v62 = vpop.eup %1816  ;;  %v657_v1 = vmul.f32 %v1815_v55, %v2279_v4 }
 0x4aa   :  { %1656 = vmatpush3.bf16.xpose.msra.mxu1 %v834_v47  ;;  %v659_v9 = vmul.f32 %v1817_v62, %v2269_v48 }
 0x4ab   :  { %v1819_v63 = vpop.eup %1818  ;;  %1725 = vmatprep.subr.bf16.mxu1 %v2149_v33 }
 0x4ac   :  { %v658_v3 = vmul.f32 %v1819_v63, %v2287_v10  ;;  %v1821_v57 = vpop.eup %1820  ;;  %v668_v15 = vpack.c.bf16 %v660_v23, %v659_v9 }
 0x4ad   :  { %v661_v17 = vmul.f32 %v1821_v57, %v2266_v61 }
 0x4ae   :  { %v667_v11 = vpack.c.bf16 %v658_v3, %v657_v1 }
 0x4af   :  { %v1823_v14 = vpop.eup %1822 }
 0x4b0   :  { %v1825_v16 = vpop.eup %1824  ;;  %1637 = vmatprep.mubr.msk.bf16.mxu1 %vm532_vm1, %v667_v11  ;;  %v662_v20 = vmul.f32 %v1823_v14, %v2291_v12 }
 0x4b1   :  { %1638 = vmatmul.mubr.msk.bf16.gmra.mrb[4].mxu1 %vm532_vm1, %v668_v15  ;;  %v1827_v5 = vpop.eup %1826  ;;  %v664_v4 = vmul.f32 %v1825_v16, %v2273_v0 }
 0x4b2   :  { %v669_v22 = vpack.c.bf16 %v662_v20, %v661_v17  ;;  %v663_v48 = vmul.f32 %v1827_v5, %v2261_v54 }
 0x4b4   :  { %1641 = vmatprep.mubr.msk.bf16.mxu1 %vm532_vm1, %v669_v22  ;;  %v670_v10 = vpack.c.bf16 %v664_v4, %v663_v48 }
 0x4b9   :  { %1642 = vmatmul.mubr.msk.bf16.gmra.mrb[8].mxu1 %vm532_vm1, %v670_v10 }
 0x4ba   :  { %1657 = vmatprep.mubr.msk.bf16.mxu1 %vm414_vm0, %v2147_v49 }
 0x4c1   :  { %1658 = vmatmul.mubr.msk.bf16.vlgmr.msra.gmra.mrb[12].mxu1 %vm414_vm0, %v2157_v59 }
 0x4c2   :  { %1731 = vmatpush3.bf16.msra.mxu1 %v2149_v33  ;;  %1661 = vmatprep.mubr.msk.bf16.mxu1 %vm414_vm0, %v2167_v7 }
 0x4c3   :  { %1726 = vmatprep.subr.bf16.mxu1 %v2159_v60 }
 0x4c6   :  { %1732 = vmatpush3.bf16.msra.mxu1 %v2159_v60 }
 0x4c7   :  { %1727 = vmatprep.subr.bf16.mxu1 %v2169_v8 }
 0x4c9   :  { %1662 = vmatmul.mubr.msk.bf16.gmra.mrb[16].mxu1 %vm414_vm0, %v2177_v18 }
 0x4ca   :  { %1733 = vmatpush3.bf16.msra.mxu1 %v2169_v8  ;;  %1665 = vmatprep.mubr.msk.bf16.mxu1 %vm414_vm0, %v2187_v29 }
 0x4cb   :  { %1728 = vmatprep.subr.bf16.mxu1 %v2179_v19 }
 0x4ce   :  { %1734 = vmatpush3.bf16.msra.mxu1 %v2179_v19 }
 0x4cf   :  { %1729 = vmatprep.subr.bf16.mxu1 %v2189_v30 }
 0x4d1   :  { %1666 = vmatmul.mubr.msk.bf16.gmra.mrb[20].mxu1 %vm414_vm0, %v2197_v40 }
 0x4d2   :  { %1735 = vmatpush3.bf16.msra.mxu1 %v2189_v30 }
 0x4d3   :  { %1730 = vmatprep.subr.bf16.mxu1 %v2199_v41 }
 0x4d6   :  { %1736 = vmatpush3.bf16.msra.mxu1 %v2199_v41 }
 0x543   :  { %v2353_v49 = vpop.f32.mrb[0].mxu1 }
 0x544   :  { %v2355_v33 = vpop.f32.mrb[1].mxu1 }
 0x545   :  { %v2357_v59 = vpop.f32.mrb[2].mxu1 }
 0x546   :  { %v1161_v60 = vpack.c.bf16 %v2357_v59, %v2353_v49  ;;  %v2361_v7 = vpop.f32.mrb[3].mxu1 }
 0x547   :  { %v1160_v8 = vpack.c.bf16 %v2361_v7, %v2355_v33 }
 0x584   :  { %v2365_v18 = vpop.f32.mrb[4].mxu1 }
 0x585   :  { %v2367_v19 = vpop.f32.mrb[5].mxu1 }
 0x586   :  { %v2369_v29 = vpop.f32.mrb[6].mxu1 }
 0x587   :  { %v1163_v30 = vpack.c.bf16 %v2369_v29, %v2365_v18  ;;  %v2373_v40 = vpop.f32.mrb[7].mxu1 }
 0x588   :  { %v1162_v41 = vpack.c.bf16 %v2373_v40, %v2367_v19 }
 0x58c   :  { %v2377_v54 = vpop.f32.mrb[8].mxu1 }
 0x58d   :  { %v2379_v61 = vpop.f32.mrb[9].mxu1 }
 0x58e   :  { %v2381_v0 = vpop.f32.mrb[10].mxu1 }
 0x58f   :  { %v1165_v12 = vpack.c.bf16 %v2381_v0, %v2377_v54  ;;  %v2385_v24 = vpop.f32.mrb[11].mxu1 }
 0x590   :  { %v1164_v26 = vpack.c.bf16 %v2385_v24, %v2379_v61 }
 0x594   :  { %v1659_v27 = vpop.f32.mrb[12].mxu1 }
 0x595   :  { %v870_v31 = vpop.f32.mrb[13].mxu1  ;;  %v923_v39 = vsel %vm532_vm1, %v1659_v27, -inf }
 0x596   :  { %v1660_v32 = vpop.f32.mrb[14].mxu1  ;;  %v917_v36 = vsel %vm532_vm1, %v870_v31, -inf }
 0x597   :  { %918 = vmax.xlane.f32.xlu0 %v917_v36  ;;  %v873_v37 = vpop.f32.mrb[15].mxu1  ;;  %v926_v6 = vsel %vm532_vm1, %v1660_v32, -inf }
 0x598   :  { %v920_v38 = vsel %vm532_vm1, %v873_v37, -inf }
 0x599   :  { %921 = vmax.xlane.f32.xlu1 %v920_v38 }
 0x59b   :  { %924 = vmax.xlane.f32.xlu0 %v923_v39 }
 0x59c   :  { %v2392_v42 = vpop.f32.mrb[16].mxu1 }
 0x59d   :  { %v886_v44 = vpop.f32.mrb[17].mxu1  ;;  %v935_v58 = vsel %vm532_vm1, %v2392_v42, -inf }
 0x59e   :  { %v1664_v28 = vpop.f32.mrb[18].mxu1  ;;  %v929_v34 = vsel %vm532_vm1, %v886_v44, -inf }
 0x59f   :  { %927 = vmax.xlane.f32.xlu0 %v926_v6  ;;  %v889_v21 = vpop.f32.mrb[19].mxu1  ;;  %v938_v56 = vsel %vm532_vm1, %v1664_v28, -inf }
 0x5a0   :  { %v932_v25 = vsel %vm532_vm1, %v889_v21, -inf }
 0x5a1   :  { %933 = vmax.xlane.f32.xlu1 %v932_v25 }
 0x5a3   :  { %930 = vmax.xlane.f32.xlu0 %v929_v34 }
 0x5a4   :  { %v2397_v35 = vpop.f32.mrb[20].mxu1 }
 0x5a5   :  { %939 = vmax.xlane.f32.xlu1 %v938_v56  ;;  %v902_v45 = vpop.f32.mrb[21].mxu1  ;;  %v947_v52 = vsel %vm532_vm1, %v2397_v35, -inf }
 0x5a6   :  { %v2400_v46 = vpop.f32.mrb[22].mxu1  ;;  %v941_v50 = vsel %vm532_vm1, %v902_v45, -inf }
 0x5a7   :  { %936 = vmax.xlane.f32.xlu0 %v935_v58  ;;  %v905_v13 = vpop.f32.mrb[23].mxu1  ;;  %v950_v51 = vsel %vm532_vm1, %v2400_v46, -inf }
 0x5a8   :  { %v944_v43 = vsel %vm532_vm1, %v905_v13, -inf }
 0x5a9   :  { %945 = vmax.xlane.f32.xlu1 %v944_v43 }
 0x5ab   :  { %942 = vmax.xlane.f32.xlu0 %v941_v50 }
 0x5ad   :  { %951 = vmax.xlane.f32.xlu1 %v950_v51 }
 0x5af   :  { %948 = vmax.xlane.f32.xlu0 %v947_v52 }
 0x624   :  { %v919_v53 = vpop.xlane.xlu0 %918 }
 0x625   :  { %v953_v2 = vsub.f32 %v870_v31, %v919_v53 }
 0x626   :  { %v922_v55 = vpop.xlane.xlu1 %921 }
 0x627   :  { %v965_v47 = vmul.f32 1.442695, %v953_v2  ;;  %v954_v62 = vsub.f32 %v873_v37, %v922_v55 }
 0x628   :  { %v925_v63 = vpop.xlane.xlu0 %924 }
 0x629   :  { %1828 = vpow2.f32 %v965_v47  ;;  %v967_v23 = vmul.f32 1.442695, %v954_v62  ;;  %v955_v1 = vsub.f32 %v1659_v27, %v925_v63 }
 0x62b   :  { %1830 = vpow2.f32 %v967_v23  ;;  %v969_v3 = vmul.f32 1.442695, %v955_v1 }
 0x62c   :  { %v928_v57 = vpop.xlane.xlu0 %927 }
 0x62d   :  { %1832 = vpow2.f32 %v969_v3  ;;  %v956_v9 = vsub.f32 %v1660_v32, %v928_v57 }
 0x62e   :  { %v934_v11 = vpop.xlane.xlu1 %933 }
 0x62f   :  { %v971_v14 = vmul.f32 1.442695, %v956_v9  ;;  %v958_v15 = vsub.f32 %v889_v21, %v934_v11 }
 0x630   :  { %v931_v16 = vpop.xlane.xlu0 %930 }
 0x631   :  { %1834 = vpow2.f32 %v971_v14  ;;  %v975_v17 = vmul.f32 1.442695, %v958_v15  ;;  %v957_v20 = vsub.f32 %v886_v44, %v931_v16  ;;  %v1776_v16 = vld [vmem:[%s2681_s3] sm:$0xff]  }
 0x632   :  { %v940_v5 = vpop.xlane.xlu1 %939  ;;  %1693 = vmatprep.subr.bf16.mxu1 %v1776_v16 }
 0x633   :  { %v2410_v22 = vpop.eup %1828  ;;  %1836 = vpow2.f32 %v975_v17  ;;  %v973_v4 = vmul.f32 1.442695, %v957_v20  ;;  %v960_v48 = vsub.f32 %v1664_v28, %v940_v5 }
 0x634   :  { %v937_v10 = vpop.xlane.xlu0 %936  ;;  %v989_v27 = vsel %vm532_vm1, %v2410_v22, 0.0 }
 0x635   :  { %v2414_v31 = vpop.eup %1830  ;;  %1838 = vpow2.f32 %v973_v4  ;;  %v979_v32 = vmul.f32 1.442695, %v960_v48  ;;  %v959_v36 = vsub.f32 %v2392_v42, %v937_v10  ;;  %990 = vadd.xlane.f32.xlu0 %v989_v27 }
 0x636   :  { %v946_v37 = vpop.xlane.xlu1 %945  ;;  %v992_v38 = vsel %vm532_vm1, %v2414_v31, 0.0 }
 0x637   :  { %v2419_v39 = vpop.eup %1832  ;;  %1840 = vpow2.f32 %v979_v32  ;;  %v977_v44 = vmul.f32 1.442695, %v959_v36  ;;  %v962_v28 = vsub.f32 %v905_v13, %v946_v37  ;;  %993 = vadd.xlane.f32.xlu1 %v992_v38 }
 0x638   :  { %v943_v6 = vpop.xlane.xlu0 %942  ;;  %v995_v21 = vsel %vm532_vm1, %v2419_v39, 0.0 }
 0x639   :  { %1842 = vpow2.f32 %v977_v44  ;;  %v983_v25 = vmul.f32 1.442695, %v962_v28  ;;  %v961_v34 = vsub.f32 %v902_v45, %v943_v6  ;;  %996 = vadd.xlane.f32.xlu0 %v995_v21 }
 0x63a   :  { %v952_v42 = vpop.xlane.xlu1 %951 }
 0x63b   :  { %v2423_v56 = vpop.eup %1834  ;;  %1844 = vpow2.f32 %v983_v25  ;;  %v981_v58 = vmul.f32 1.442695, %v961_v34  ;;  %v964_v43 = vsub.f32 %v2400_v46, %v952_v42 }
 0x63c   :  { %v949_v50 = vpop.xlane.xlu0 %948  ;;  %v998_v13 = vsel %vm532_vm1, %v2423_v56, 0.0 }
 0x63d   :  { %v2428_v51 = vpop.eup %1836  ;;  %1846 = vpow2.f32 %v981_v58  ;;  %v987_v52 = vmul.f32 1.442695, %v964_v43  ;;  %v963_v53 = vsub.f32 %v2397_v35, %v949_v50  ;;  %999 = vadd.xlane.f32.xlu1 %v998_v13 }
 0x63e   :  { %v1004_v46 = vsel %vm532_vm1, %v2428_v51, 0.0 }
 0x63f   :  { %v2431_v45 = vpop.eup %1838  ;;  %1848 = vpow2.f32 %v987_v52  ;;  %v985_v2 = vmul.f32 1.442695, %v963_v53 }
 0x640   :  { %v1001_v55 = vsel %vm532_vm1, %v2431_v45, 0.0 }
 0x641   :  { %v2437_v47 = vpop.eup %1840  ;;  %1850 = vpow2.f32 %v985_v2  ;;  %1002 = vadd.xlane.f32.xlu0 %v1001_v55  ;;  %1005 = vadd.xlane.f32.xlu1 %v1004_v46 }
 0x642   :  { %v1010_v63 = vsel %vm532_vm1, %v2437_v47, 0.0 }
 0x643   :  { %v2439_v62 = vpop.eup %1842 }
 0x644   :  { %v1007_v35 = vsel %vm532_vm1, %v2439_v62, 0.0 }
 0x645   :  { %v2445_v23 = vpop.eup %1844  ;;  %1008 = vadd.xlane.f32.xlu0 %v1007_v35  ;;  %1011 = vadd.xlane.f32.xlu1 %v1010_v63 }
 0x646   :  { %v1016_v57 = vsel %vm532_vm1, %v2445_v23, 0.0 }
 0x647   :  { %v2447_v1 = vpop.eup %1846 }
 0x648   :  { %v1013_v3 = vsel %vm532_vm1, %v2447_v1, 0.0 }
 0x649   :  { %v2453_v9 = vpop.eup %1848  ;;  %1014 = vadd.xlane.f32.xlu0 %v1013_v3  ;;  %1017 = vadd.xlane.f32.xlu1 %v1016_v57  ;;  %v1777_v3 = vld [vmem:[%s2681_s3 + $0x8] sm:$0xff]  }
 0x64a   :  { %v1022_v15 = vsel %vm532_vm1, %v2453_v9, 0.0 }
 0x64b   :  { %v2455_v11 = vpop.eup %1850 }
 0x64c   :  { %v1019_v14 = vsel %vm532_vm1, %v2455_v11, 0.0 }
 0x64d   :  { %1020 = vadd.xlane.f32.xlu0 %v1019_v14  ;;  %1023 = vadd.xlane.f32.xlu1 %v1022_v15 }
 0x6c2   :  { %v991_v17 = vpop.xlane.xlu0 %990 }
 0x6c3   :  { %1852 = vrcp.f32 %v991_v17 }
 0x6c4   :  { %v994_v20 = vpop.xlane.xlu1 %993 }
 0x6c5   :  { %1854 = vrcp.f32 %v994_v20 }
 0x6c6   :  { %v997_v5 = vpop.xlane.xlu0 %996 }
 0x6c7   :  { %1856 = vrcp.f32 %v997_v5 }
 0x6ca   :  { %v1000_v4 = vpop.xlane.xlu1 %999 }
 0x6cb   :  { %1858 = vrcp.f32 %v1000_v4 }
 0x6cd   :  { %v1853_v48 = vpop.eup %1852 }
 0x6ce   :  { %v1003_v10 = vpop.xlane.xlu0 %1002  ;;  %v1006_v27 = vpop.xlane.xlu1 %1005  ;;  %v1037_v36 = vmul.f32 %v1853_v48, %v2410_v22 }
 0x6cf   :  { %v1855_v32 = vpop.eup %1854  ;;  %1860 = vrcp.f32 %v1003_v10 }
 0x6d0   :  { %1862 = vrcp.f32 %v1006_v27  ;;  %v1038_v37 = vmul.f32 %v1855_v32, %v2414_v31 }
 0x6d1   :  { %v1857_v6 = vpop.eup %1856 }
 0x6d2   :  { %v1009_v38 = vpop.xlane.xlu0 %1008  ;;  %v1012_v44 = vpop.xlane.xlu1 %1011  ;;  %v1049_v28 = vpack.c.bf16 %v1038_v37, %v1037_v36  ;;  %v1039_v25 = vmul.f32 %v1857_v6, %v2419_v39 }
 0x6d3   :  { %1864 = vrcp.f32 %v1009_v38 }
 0x6d4   :  { %1866 = vrcp.f32 %v1012_v44  ;;  %1681 = vmatprep.mubr.msk.bf16.mxu0 %vm532_vm1, %v1049_v28 }
 0x6d5   :  { %v1859_v21 = vpop.eup %1858 }
 0x6d6   :  { %v1040_v34 = vmul.f32 %v1859_v21, %v2423_v56  ;;  %v1015_v42 = vpop.xlane.xlu0 %1014  ;;  %v1018_v58 = vpop.xlane.xlu1 %1017 }
 0x6d7   :  { %1868 = vrcp.f32 %v1015_v42 }
 0x6d8   :  { %v1050_v43 = vpack.c.bf16 %v1040_v34, %v1039_v25  ;;  %1870 = vrcp.f32 %v1018_v58 }
 0x6d9   :  { %v1861_v22 = vpop.eup %1860 }
 0x6da   :  { %v1863_v31 = vpop.eup %1862  ;;  %v1021_v50 = vpop.xlane.xlu0 %1020  ;;  %1682 = vmatmul.mubr.msk.bf16.vlgmr.msra.gmra.mrb[60].mxu0 %vm532_vm1, %v1050_v43  ;;  %v1041_v52 = vmul.f32 %v1861_v22, %v2431_v45 }
 0x6db   :  { %v1024_v13 = vpop.xlane.xlu1 %1023  ;;  %1872 = vrcp.f32 %v1021_v50  ;;  %v1042_v53 = vmul.f32 %v1863_v31, %v2428_v51 }
 0x6dc   :  { %1874 = vrcp.f32 %v1024_v13 }
 0x6dd   :  { %v1865_v39 = vpop.eup %1864  ;;  %v1051_v2 = vpack.c.bf16 %v1042_v53, %v1041_v52 }
 0x6de   :  { %v1867_v56 = vpop.eup %1866  ;;  %v1043_v55 = vmul.f32 %v1865_v39, %v2439_v62 }
 0x6df   :  { %v1044_v46 = vmul.f32 %v1867_v56, %v2437_v47  ;;  %1685 = vmatprep.mubr.msk.bf16.mxu1 %vm532_vm1, %v1051_v2  ;;  %v1778_v47 = vld [vmem:[%s2681_s3 + $0x10] sm:$0xff]  }
 0x6e1   :  { %v1869_v35 = vpop.eup %1868  ;;  %v1052_v63 = vpack.c.bf16 %v1044_v46, %v1043_v55 }
 0x6e2   :  { %v1871_v45 = vpop.eup %1870  ;;  %v1045_v57 = vmul.f32 %v1869_v35, %v2447_v1 }
 0x6e3   :  { %1686 = vmatmul.mubr.msk.bf16.vlgmr.msra.gmra.mrb[24].mxu1 %vm532_vm1, %v1052_v63  ;;  %v1046_v51 = vmul.f32 %v1871_v45, %v2445_v23  ;;  %v1779_v23 = vld [vmem:[%s2681_s3 + $0x18] sm:$0xff]  }
 0x6e4   :  { %1694 = vmatpush3.bf16.msra.mxu1 %v1776_v16 }
 0x6e5   :  { %v1873_v14 = vpop.eup %1872  ;;  %v1053_v62 = vpack.c.bf16 %v1046_v51, %v1045_v57  ;;  %1695 = vmatprep.subr.bf16.mxu1 %v1777_v3 }
 0x6e6   :  { %v1875_v15 = vpop.eup %1874  ;;  %v1047_v17 = vmul.f32 %v1873_v14, %v2455_v11 }
 0x6e7   :  { %1689 = vmatprep.mubr.msk.bf16.mxu1 %vm532_vm1, %v1053_v62  ;;  %v1048_v20 = vmul.f32 %v1875_v15, %v2453_v9  ;;  %v2524_v9 = vld [vmem:[%s2682_s4] ss:$0 sm:$0xff] }
 0x6e8   :  { %1696 = vmatpush3.bf16.msra.mxu1 %v1777_v3 }
 0x6e9   :  { %v1054_v1 = vpack.c.bf16 %v1048_v20, %v1047_v17  ;;  %1697 = vmatprep.subr.bf16.mxu1 %v1778_v47 }
 0x6eb   :  { %1690 = vmatmul.mubr.msk.bf16.gmra.mrb[28].mxu1 %vm532_vm1, %v1054_v1 }
 0x6ec   :  { %1698 = vmatpush3.bf16.msra.mxu1 %v1778_v47  ;;  %1701 = vmatprep.mubr.msk.bf16.mxu1 %vm414_vm0, %v1160_v8 }
 0x6ed   :  { %1699 = vmatprep.subr.bf16.mxu1 %v1779_v23 }
 0x6f0   :  { %1700 = vmatpush3.bf16.msra.mxu1 %v1779_v23 }
 0x6f3   :  { %1702 = vmatmul.mubr.msk.bf16.vlgmr.msra.gmra.mrb[32].mxu1 %vm414_vm0, %v1161_v60 }
 0x6f4   :  { %1705 = vmatprep.mubr.msk.bf16.mxu1 %vm414_vm0, %v1162_v41 }
 0x6fb   :  { %1706 = vmatmul.mubr.msk.bf16.gmra.mrb[36].mxu1 %vm414_vm0, %v1163_v30 }
 0x6fc   :  { %1709 = vmatprep.mubr.msk.bf16.mxu1 %vm414_vm0, %v1164_v26 }
 0x703   :  { %1710 = vmatmul.mubr.msk.bf16.gmra.mrb[40].mxu1 %vm414_vm0, %v1165_v12 }
 0x7ad   :  { %v1683_v49 = vpop.f32.mrb[60].mxu0 }
 0x7ae   :  { %v1113_v33 = vpop.f32.mrb[61].mxu0 }
 0x7af   :  { %v1684_v59 = vpop.f32.mrb[62].mxu0 }
 0x7b0   :  { %v1167_v60 = vpack.c.bf16 %v1684_v59, %v1683_v49  ;;  %v1116_v7 = vpop.f32.mrb[63].mxu0 }
 0x7b1   :  { %v1166_v8 = vpack.c.bf16 %v1116_v7, %v1113_v33 }
 0x7b3   :  { %1713 = vmatprep.mubr.msk.bf16.mxu1 %vm414_vm0, %v1166_v8 }
 0x7b4   :  { %1714 = vmatmul.mubr.msk.bf16.gmra.mrb[44].mxu1 %vm414_vm0, %v1167_v60 }
 0x7b6   :  { %v1687_v18 = vpop.f32.mrb[24].mxu1 }
 0x7b7   :  { %v1129_v19 = vpop.f32.mrb[25].mxu1 }
 0x7b8   :  { %v1688_v29 = vpop.f32.mrb[26].mxu1 }
 0x7b9   :  { %v1169_v30 = vpack.c.bf16 %v1688_v29, %v1687_v18  ;;  %v1132_v40 = vpop.f32.mrb[27].mxu1 }
 0x7ba   :  { %v1168_v41 = vpack.c.bf16 %v1132_v40, %v1129_v19 }
 0x7bc   :  { %1717 = vmatprep.mubr.msk.bf16.mxu1 %vm414_vm0, %v1168_v41 }
 0x7bd   :  { %1718 = vmatmul.mubr.msk.bf16.gmra.mrb[48].mxu1 %vm414_vm0, %v1169_v30 }
 0x7be   :  { %v1691_v54 = vpop.f32.mrb[28].mxu1 }
 0x7bf   :  { %v1145_v61 = vpop.f32.mrb[29].mxu1 }
 0x7c0   :  { %v1692_v0 = vpop.f32.mrb[30].mxu1 }
 0x7c1   :  { %v1171_v12 = vpack.c.bf16 %v1692_v0, %v1691_v54  ;;  %v1148_v24 = vpop.f32.mrb[31].mxu1 }
 0x7c2   :  { %v1170_v26 = vpack.c.bf16 %v1148_v24, %v1145_v61 }
 0x7c4   :  { %1721 = vmatprep.mubr.msk.bf16.mxu1 %vm414_vm0, %v1170_v26 }
 0x7c5   :  { %1722 = vmatmul.mubr.msk.bf16.gmra.mrb[52].mxu1 %vm414_vm0, %v1171_v12 }
 0x7c6   :  { %v1703_v11 = vpop.f32.mrb[32].mxu1 }
 0x7c7   :  { %v1281_v16 = vpop.f32.mrb[33].mxu1  ;;  %v1290_v36 = vadd.f32 %v1703_v11, %v2524_v9 }
 0x7c8   :  { %v1282_v5 = vadd.f32 %v2524_v9, %v1281_v16  ;;  %v1704_v4 = vpop.f32.mrb[34].mxu1 }
 0x7c9   :  { %v1284_v48 = vpop.f32.mrb[35].mxu1  ;;  %v1293_v44 = vadd.f32 %v1704_v4, %v2524_v9 }
 0x7ca   :  { %1376 = vxpose.xlu0.b32.start [1/12] (short) %v1282_v5, 128  ;;  %v1285_v10 = vadd.f32 %v2524_v9, %v1284_v48 }
 0x7ce   :  { %v1707_v27 = vpop.f32.mrb[36].mxu1  ;;  %1377 = vxpose.xlu0.b32.cont [2/12] (short) %v1285_v10, 128 }
 0x7cf   :  { %v1297_v32 = vpop.f32.mrb[37].mxu1  ;;  %v1306_v58 = vadd.f32 %v1707_v27, %v2524_v9 }
 0x7d0   :  { %v1708_v37 = vpop.f32.mrb[38].mxu1  ;;  %v1298_v21 = vadd.f32 %v2524_v9, %v1297_v32 }
 0x7d1   :  { %v1300_v38 = vpop.f32.mrb[39].mxu1  ;;  %v1309_v43 = vadd.f32 %v1708_v37, %v2524_v9 }
 0x7d2   :  { %1378 = vxpose.xlu0.b32.cont [3/12] (short) %v1290_v36, 128  ;;  %v1301_v42 = vadd.f32 %v2524_v9, %v1300_v38 }
 0x7d6   :  { %v1711_v28 = vpop.f32.mrb[40].mxu1  ;;  %1379 = vxpose.xlu0.b32.cont [4/12] (short) %v1293_v44, 128 }
 0x7d7   :  { %v1313_v6 = vpop.f32.mrb[41].mxu1  ;;  %v1322_v50 = vadd.f32 %v1711_v28, %v2524_v9 }
 0x7d8   :  { %v1712_v25 = vpop.f32.mrb[42].mxu1  ;;  %v1314_v22 = vadd.f32 %v2524_v9, %v1313_v6 }
 0x7d9   :  { %v1316_v34 = vpop.f32.mrb[43].mxu1  ;;  %v1325_v13 = vadd.f32 %v1712_v25, %v2524_v9 }
 0x7da   :  { %1380 = vxpose.xlu0.b32.cont [5/12] (short) %v1298_v21, 128  ;;  %v1317_v31 = vadd.f32 %v2524_v9, %v1316_v34 }
 0x7de   :  { %1381 = vxpose.xlu0.b32.cont [6/12] (short) %v1301_v42, 128 }
 0x7e2   :  { %1382 = vxpose.xlu0.b32.cont [7/12] (short) %v1306_v58, 128 }
 0x7e6   :  { %1383 = vxpose.xlu0.b32.cont [8/12] (short) %v1309_v43, 128 }
 0x7ea   :  { %1384 = vxpose.xlu0.b32.cont [9/12] (short) %v1314_v22, 128 }
 0x7ee   :  { %1385 = vxpose.xlu0.b32.cont [10/12] (short) %v1317_v31, 128 }
 0x7f2   :  { %1386 = vxpose.xlu0.b32.cont [11/12] (short) %v1322_v50, 128 }
 0x7f6   :  { %1387 = vxpose.xlu0.b32.end [12/12] (short) %v1325_v13, 128 }
 0x84a   :  { %v1392_v52 = vpop.trf.xlu0 }
 0x84b   :  { %1440 = vst.msk [vmem:[%s2683_s5] sm:$0xff] %vm532_vm1, %v1392_v52 }
 0x84e   :  { %v1393_v46 = vpop.trf.xlu0 }
 0x84f   :  { %1441 = vst.msk [vmem:[%s2683_s5 + $0x8] sm:$0xff] %vm532_vm1, %v1393_v46 }
 0x852   :  { %v1394_v3 = vpop.trf.xlu0 }
 0x853   :  { %1442 = vst.msk [vmem:[%s2683_s5 + $0x10] sm:$0xff] %vm532_vm1, %v1394_v3 }
 0x856   :  { %v1395_v62 = vpop.trf.xlu0 }
 0x857   :  { %1443 = vst.msk [vmem:[%s2683_s5 + $0x18] sm:$0xff] %vm532_vm1, %v1395_v62 }
 0x85a   :  { %v1396_v17 = vpop.trf.xlu0 }
 0x85b   :  { %1444 = vst.msk [vmem:[%s2683_s5 + $0x20] sm:$0xff] %vm532_vm1, %v1396_v17 }
 0x85e   :  { %v1397_v33 = vpop.trf.xlu0 }
 0x85f   :  { %1445 = vst.msk [vmem:[%s2683_s5 + $0x28] sm:$0xff] %vm532_vm1, %v1397_v33 }
 0x862   :  { %v1398_v60 = vpop.trf.xlu0 }
 0x863   :  { %1446 = vst.msk [vmem:[%s2683_s5 + $0x30] sm:$0xff] %vm532_vm1, %v1398_v60 }
 0x866   :  { %v1399_v8 = vpop.trf.xlu0 }
 0x867   :  { %1447 = vst.msk [vmem:[%s2683_s5 + $0x38] sm:$0xff] %vm532_vm1, %v1399_v8 }
 0x86a   :  { %v1400_v19 = vpop.trf.xlu0 }
 0x86b   :  { %1448 = vst.msk [vmem:[%s2683_s5 + $0x40] sm:$0xff] %vm532_vm1, %v1400_v19 }
 0x86e   :  { %v1401_v30 = vpop.trf.xlu0 }
 0x86f   :  { %1449 = vst.msk [vmem:[%s2683_s5 + $0x48] sm:$0xff] %vm532_vm1, %v1401_v30 }
 0x872   :  { %v1402_v41 = vpop.trf.xlu0 }
 0x873   :  { %1450 = vst.msk [vmem:[%s2683_s5 + $0x50] sm:$0xff] %vm532_vm1, %v1402_v41 }
 0x876   :  { %v1403_v61 = vpop.trf.xlu0 }
 0x877   :  { %1451 = vst.msk [vmem:[%s2683_s5 + $0x58] sm:$0xff] %vm532_vm1, %v1403_v61 }
 0x87a   :  { %v1404_v12 = vpop.trf.xlu0 }
 0x87b   :  { %1452 = vst.msk [vmem:[%s2683_s5 + $0x60] sm:$0xff] %vm532_vm1, %v1404_v12 }
 0x87e   :  { %v1405_v24 = vpop.trf.xlu0 }
 0x87f   :  { %1453 = vst.msk [vmem:[%s2683_s5 + $0x68] sm:$0xff] %vm532_vm1, %v1405_v24 }
 0x882   :  { %v1406_v26 = vpop.trf.xlu0 }
 0x883   :  { %1454 = vst.msk [vmem:[%s2683_s5 + $0x70] sm:$0xff] %vm532_vm1, %v1406_v26 }
 0x887   :  { %v1715_v53 = vpop.f32.mrb[44].mxu1 }
 0x888   :  { %v1329_v39 = vpop.f32.mrb[45].mxu1  ;;  %v1338_v45 = vadd.f32 %v1715_v53, %v2524_v9 }
 0x889   :  { %v1330_v2 = vadd.f32 %v2524_v9, %v1329_v39  ;;  %v1716_v56 = vpop.f32.mrb[46].mxu1 }
 0x88a   :  { %v1332_v55 = vpop.f32.mrb[47].mxu1  ;;  %v1341_v47 = vadd.f32 %v1716_v56, %v2524_v9 }
 0x88b   :  { %1408 = vxpose.xlu1.b32.start [1/12] (short) %v1330_v2, 128  ;;  %v1333_v35 = vadd.f32 %v2524_v9, %v1332_v55 }
 0x88f   :  { %1409 = vxpose.xlu1.b32.cont [2/12] (short) %v1333_v35, 128 }
 0x890   :  { %v1719_v63 = vpop.f32.mrb[48].mxu1 }
 0x891   :  { %v1345_v57 = vpop.f32.mrb[49].mxu1  ;;  %v1354_v7 = vadd.f32 %v1719_v63, %v2524_v9 }
 0x892   :  { %v1720_v51 = vpop.f32.mrb[50].mxu1  ;;  %v1346_v20 = vadd.f32 %v2524_v9, %v1345_v57 }
 0x893   :  { %v1348_v14 = vpop.f32.mrb[51].mxu1  ;;  %1410 = vxpose.xlu1.b32.cont [3/12] (short) %v1338_v45, 128  ;;  %v1357_v18 = vadd.f32 %v1720_v51, %v2524_v9 }
 0x894   :  { %v1349_v59 = vadd.f32 %v2524_v9, %v1348_v14 }
 0x897   :  { %1411 = vxpose.xlu1.b32.cont [4/12] (short) %v1341_v47, 128 }
 0x898   :  { %v1723_v15 = vpop.f32.mrb[52].mxu1 }
 0x899   :  { %v1361_v1 = vpop.f32.mrb[53].mxu1  ;;  %v1370_v54 = vadd.f32 %v1723_v15, %v2524_v9 }
 0x89a   :  { %v1724_v23 = vpop.f32.mrb[54].mxu1  ;;  %v1362_v29 = vadd.f32 %v2524_v9, %v1361_v1 }
 0x89b   :  { %v1364_v49 = vpop.f32.mrb[55].mxu1  ;;  %1412 = vxpose.xlu1.b32.cont [5/12] (short) %v1346_v20, 128  ;;  %v1373_v0 = vadd.f32 %v1724_v23, %v2524_v9 }
 0x89c   :  { %v1365_v40 = vadd.f32 %v2524_v9, %v1364_v49  ;;  %v1407_v9 = vpop.trf.xlu0 }
 0x89d   :  { %1455 = vst.msk [vmem:[%s2683_s5 + $0x78] sm:$0xff] %vm532_vm1, %v1407_v9 }
 0x89f   :  { %1413 = vxpose.xlu1.b32.cont [6/12] (short) %v1349_v59, 128 }
 0x8a3   :  { %1414 = vxpose.xlu1.b32.cont [7/12] (short) %v1354_v7, 128 }
 0x8a7   :  { %1415 = vxpose.xlu1.b32.cont [8/12] (short) %v1357_v18, 128 }
 0x8ab   :  { %1416 = vxpose.xlu1.b32.cont [9/12] (short) %v1362_v29, 128 }
 0x8af   :  { %1417 = vxpose.xlu1.b32.cont [10/12] (short) %v1365_v40, 128 }
 0x8b3   :  { %1418 = vxpose.xlu1.b32.cont [11/12] (short) %v1370_v54, 128 }
 0x8b7   :  { %1419 = vxpose.xlu1.b32.end [12/12] (short) %v1373_v0, 128 }
 0x90b   :  { %v1424_v11 = vpop.trf.xlu1 }
 0x90c   :  { %1456 = vst.msk [vmem:[%s2683_s5 + $0x80] sm:$0xff] %vm532_vm1, %v1424_v11 }
 0x90f   :  { %v1425_v16 = vpop.trf.xlu1 }
 0x910   :  { %1457 = vst.msk [vmem:[%s2683_s5 + $0x88] sm:$0xff] %vm532_vm1, %v1425_v16 }
 0x913   :  { %v1426_v5 = vpop.trf.xlu1 }
 0x914   :  { %1458 = vst.msk [vmem:[%s2683_s5 + $0x90] sm:$0xff] %vm532_vm1, %v1426_v5 }
 0x917   :  { %v1427_v4 = vpop.trf.xlu1 }
 0x918   :  { %1459 = vst.msk [vmem:[%s2683_s5 + $0x98] sm:$0xff] %vm532_vm1, %v1427_v4 }
 0x91b   :  { %v1428_v48 = vpop.trf.xlu1 }
 0x91c   :  { %1460 = vst.msk [vmem:[%s2683_s5 + $0xa0] sm:$0xff] %vm532_vm1, %v1428_v48 }
 0x91f   :  { %v1429_v10 = vpop.trf.xlu1 }
 0x920   :  { %1461 = vst.msk [vmem:[%s2683_s5 + $0xa8] sm:$0xff] %vm532_vm1, %v1429_v10 }
 0x923   :  { %v1430_v27 = vpop.trf.xlu1 }
 0x924   :  { %1462 = vst.msk [vmem:[%s2683_s5 + $0xb0] sm:$0xff] %vm532_vm1, %v1430_v27 }
 0x927   :  { %v1431_v32 = vpop.trf.xlu1 }
 0x928   :  { %1463 = vst.msk [vmem:[%s2683_s5 + $0xb8] sm:$0xff] %vm532_vm1, %v1431_v32 }
 0x92b   :  { %v1432_v36 = vpop.trf.xlu1 }
 0x92c   :  { %1464 = vst.msk [vmem:[%s2683_s5 + $0xc0] sm:$0xff] %vm532_vm1, %v1432_v36 }
 0x92f   :  { %v1433_v37 = vpop.trf.xlu1 }
 0x930   :  { %1465 = vst.msk [vmem:[%s2683_s5 + $0xc8] sm:$0xff] %vm532_vm1, %v1433_v37 }
 0x933   :  { %v1434_v38 = vpop.trf.xlu1 }
 0x934   :  { %1466 = vst.msk [vmem:[%s2683_s5 + $0xd0] sm:$0xff] %vm532_vm1, %v1434_v38 }
 0x937   :  { %v1435_v44 = vpop.trf.xlu1 }
 0x938   :  { %1467 = vst.msk [vmem:[%s2683_s5 + $0xd8] sm:$0xff] %vm532_vm1, %v1435_v44 }
 0x93b   :  { %v1436_v28 = vpop.trf.xlu1 }
 0x93c   :  { %1468 = vst.msk [vmem:[%s2683_s5 + $0xe0] sm:$0xff] %vm532_vm1, %v1436_v28 }
 0x93f   :  { %v1437_v6 = vpop.trf.xlu1 }
 0x940   :  { %1469 = vst.msk [vmem:[%s2683_s5 + $0xe8] sm:$0xff] %vm532_vm1, %v1437_v6 }
 0x943   :  { %v1438_v21 = vpop.trf.xlu1 }
 0x944   :  { %1470 = vst.msk [vmem:[%s2683_s5 + $0xf0] sm:$0xff] %vm532_vm1, %v1438_v21 }
 0x947   :  { %v1439_v25 = vpop.trf.xlu1 }
 0x948   :  { %1471 = vst.msk [vmem:[%s2683_s5 + $0xf8] sm:$0xff] %vm532_vm1, %v1439_v25 }

</bundles_post_ra>
